<compile_context>
chip_gen: v7x
topology: tpu7x:2x2x1
jax: 0.10.0
libtpu: 0.0.40
codegen_flags: <defaults>
</compile_context>

<pallas_src>
import functools
import math

import jax
import jax.numpy as jnp
from jax.experimental import pallas as pl
from jax.experimental.pallas import tpu as pltpu


def _attn_kernel(*refs, scale, head_dim, heads_per_block, has_mask):
    if has_mask:
        x_ref, wqkv_ref, wo_ref, mask_ref, o_ref, acc_ref = refs
    else:
        x_ref, wqkv_ref, wo_ref, o_ref, acc_ref = refs
        mask_ref = None

    hg = pl.program_id(1)
    bblk, S, H = x_ref.shape
    hd = head_dim

    x = x_ref[...]                              # (bblk, S, H)
    in_dtype = x.dtype
    x_flat = x.reshape(bblk * S, H)

    if mask_ref is not None:
        mask = mask_ref[...].reshape(bblk, S, S)  # drop the size-1 head axis
    else:
        mask = None

    ctx_heads = []
    for sub in range(heads_per_block):
        # Fused Q/K/V projection for this head: one matmul, N = 3*head_dim.
        qkv = jnp.dot(x_flat, wqkv_ref[sub],
                      preferred_element_type=jnp.float32)   # (bblk*S, 3*hd)
        # 1/sqrt(head_dim) folded into q once; lane-aligned slices (hd=128k).
        qh = (qkv[:, :hd] * scale).astype(in_dtype).reshape(bblk, S, hd)
        kh = qkv[:, hd:2 * hd].astype(in_dtype).reshape(bblk, S, hd)
        vh = qkv[:, 2 * hd:].astype(in_dtype).reshape(bblk, S, hd)

        # q.k^T contracting head_dim (batched over the batch block) -- MXU
        # consumes kh directly, no XLU transpose.
        s = jnp.einsum('bqd,bkd->bqk', qh, kh,
                       preferred_element_type=jnp.float32)  # (bblk, S, S)
        if mask is not None:
            s = s + mask
            s = jnp.maximum(s, jnp.finfo(jnp.float32).min)

        # Softmax in float32 along keys; denominator reciprocal on the EUP.
        s_max = jnp.max(s, axis=-1, keepdims=True)
        p = jnp.exp(s - s_max)
        p = p * pl.reciprocal(jnp.sum(p, axis=-1, keepdims=True), approx=True)
        p = p.astype(in_dtype)                  # matches torch .to(q.dtype)

        ctx = jnp.einsum('bqk,bkd->bqd', p, vh,
                         preferred_element_type=jnp.float32).astype(in_dtype)
        ctx_heads.append(ctx)                   # (bblk, S, hd)

    # Fuse this head-group's output projection: ctx (bblk*S, hpb*hd) through
    # the contiguous head-major Wo block (hpb*hd, H) -- K = hpb*hd.
    if heads_per_block == 1:
        ctx_cat = ctx_heads[0]
    else:
        ctx_cat = jnp.concatenate(ctx_heads, axis=-1)        # lane-aligned
    ctx_flat = ctx_cat.reshape(bblk * S, heads_per_block * hd)
    wo_flat = wo_ref[...].reshape(heads_per_block * hd, H)
    contrib = jnp.dot(ctx_flat, wo_flat,
                      preferred_element_type=jnp.float32)    # (bblk*S, H) f32

    @pl.when(hg == 0)
    def _first():                               # no zero-fill pass
        acc_ref[...] = contrib

    @pl.when(hg > 0)
    def _accumulate():
        acc_ref[...] = acc_ref[...] + contrib

    @pl.when(hg == pl.num_programs(1) - 1)
    def _finalize():
        o_ref[...] = acc_ref[...].reshape(bblk, S, H).astype(o_ref.dtype)


def _vmem_capacity_bytes():
    try:
        return int(pltpu.get_tpu_info().vmem_capacity_bytes)
    except Exception:
        return 64 << 20   # conservative (v7x per-TC physical VMEM)


def _resident_bytes(bblk, S, H, hd, hpb, itemsize, has_mask):
    """Rough per-step VMEM residency (double-buffered I/O + live f32 temps)."""
    xio = 4 * bblk * S * H * itemsize                 # x + out, 2 buffers each
    w = 2 * hpb * (3 * hd + hd) * H * itemsize        # wqkv + wo blocks
    acc = bblk * S * H * 4
    mask = 2 * bblk * S * S * 4 if has_mask else 0
    live = bblk * S * (2 * S + 4 * hd + 2 * H) * 4    # scores/p, qkv, ctx/contrib
    return xio + w + acc + mask + live


def graphsgpt_self_attention(hidden_states, wq_t, wk_t, wv_t, wo_t,
                             attention_mask=None, *, num_heads,
                             heads_per_block=None, batch_block=None):
    """Pallas implementation of GraphsGPTSelfAttention.forward (no-cache path).

    hidden_states:  [B, S, H]
    w*_t:           [H, H], pre-transposed nn.Linear weights (W.T, [in, out])
    attention_mask: optional [B, 1, S, S] additive mask; None skips the mask
                    add, the finfo-min clamp, and the mask DMA entirely.
    returns attn_output: [B, S, H]
    """
    B, S, H = hidden_states.shape
    if H % num_heads != 0:
        raise ValueError("hidden_size must be divisible by num_heads")
    head_dim = H // num_heads
    scale = 1.0 / math.sqrt(head_dim)
    has_mask = attention_mask is not None
    itemsize = jnp.dtype(hidden_states.dtype).itemsize

    # Two heads per step fills the 256-deep v6e/v7x MXU for the Wo matmul and
    # halves accumulator passes; head_dim >= 256 already fills it.
    if heads_per_block is None:
        heads_per_block = 2 if (num_heads % 2 == 0 and head_dim < 256) else 1
    if num_heads % heads_per_block != 0:
        raise ValueError("num_heads must be divisible by heads_per_block")
    num_head_groups = num_heads // heads_per_block

    vmem_budget = int(0.8 * _vmem_capacity_bytes())
    if batch_block is None:
        batch_block = 1
        for cand in range(1, B + 1):
            if B % cand == 0 and _resident_bytes(
                    cand, S, H, head_dim, heads_per_block, itemsize,
                    has_mask) <= vmem_budget:
                batch_block = cand
    if B % batch_block != 0:
        raise ValueError("batch size must be divisible by batch_block")
    num_batch_blocks = B // batch_block

    resident = _resident_bytes(batch_block, S, H, head_dim, heads_per_block,
                               itemsize, has_mask)
    vmem_limit = int(min(vmem_budget, max(32 << 20, 2 * resident)))

    # One-time weight re-layout (outside the kernel; cache in real use):
    #   wqkv_hm[h] = [Wq_T[:, head h] | Wk_T[:, head h] | Wv_T[:, head h]]
    #   wo_hm[h]   = Wo_T[head h rows, :]
    def _head_major(w_t):                       # (H, H) -> (nh, H, hd)
        return w_t.reshape(H, num_heads, head_dim).transpose(1, 0, 2)

    wqkv_hm = jnp.concatenate(
        [_head_major(wq_t), _head_major(wk_t), _head_major(wv_t)],
        axis=-1)                                # (nh, H, 3*hd)
    wo_hm = wo_t.reshape(num_heads, head_dim, H)  # (nh, hd, H)

    bytes_accessed = (2 * B * S * H * itemsize
                      + num_batch_blocks * 4 * H * H * itemsize)
    if has_mask:
        bytes_accessed += B * S * S * jnp.dtype(attention_mask.dtype).itemsize
    cost = pl.CostEstimate(
        flops=8 * B * S * H * H + 4 * B * num_heads * S * S * head_dim,
        transcendentals=B * num_heads * S * S,
        bytes_accessed=bytes_accessed)

    in_specs = [
        pl.BlockSpec((batch_block, S, H), lambda b, h: (b, 0, 0)),     # x
        pl.BlockSpec((heads_per_block, H, 3 * head_dim),
                     lambda b, h: (h, 0, 0)),                          # Wqkv
        pl.BlockSpec((heads_per_block, head_dim, H),
                     lambda b, h: (h, 0, 0)),                          # Wo
    ]
    args = [hidden_states, wqkv_hm, wo_hm]
    if has_mask:
        in_specs.append(pl.BlockSpec((batch_block, 1, S, S),
                                     lambda b, h: (b, 0, 0, 0)))
        args.append(attention_mask)

    kernel = functools.partial(_attn_kernel, scale=scale, head_dim=head_dim,
                               heads_per_block=heads_per_block,
                               has_mask=has_mask)

    return pl.pallas_call(
        kernel,
        out_shape=jax.ShapeDtypeStruct((B, S, H), hidden_states.dtype),
        grid_spec=pltpu.PrefetchScalarGridSpec(
            num_scalar_prefetch=0,
            grid=(num_batch_blocks, num_head_groups),
            in_specs=in_specs,
            out_specs=pl.BlockSpec((batch_block, S, H),
                                   lambda b, h: (b, 0, 0)),
            scratch_shapes=[pltpu.VMEM((batch_block * S, H), jnp.float32)],
        ),
        compiler_params=pltpu.CompilerParams(
            dimension_semantics=("parallel", "arbitrary"),
            vmem_limit_bytes=vmem_limit),
        cost_estimate=cost,
    )(*args)


def _reference(hidden_states, wq_t, wk_t, wv_t, wo_t, attention_mask,
               num_heads):
    """Pure-JAX reference mirroring the PyTorch forward exactly."""
    B, S, H = hidden_states.shape
    hd = H // num_heads
    finfo_min = jnp.finfo(jnp.float32).min

    def split_heads(t):  # [B, S, H] -> [B, nh, S, hd]
        return t.reshape(B, S, num_heads, hd).transpose(0, 2, 1, 3)

    q = split_heads(hidden_states @ wq_t)
    k = split_heads(hidden_states @ wk_t)
    v = split_heads(hidden_states @ wv_t)

    attn_weights = jnp.einsum('bnqd,bnkd->bnqk', q, k) / math.sqrt(hd)
    if attention_mask is not None:
        attn_weights = attn_weights + attention_mask
        attn_weights = jnp.maximum(attn_weights, finfo_min)
    attn_weights = jax.nn.softmax(attn_weights.astype(jnp.float32), axis=-1)
    attn_weights = attn_weights.astype(q.dtype)
    attn_output = jnp.einsum('bnqk,bnkd->bnqd', attn_weights, v)
    attn_output = attn_output.transpose(0, 2, 1, 3).reshape(B, S, H)
    return attn_output @ wo_t


if __name__ == "__main__":
    def run_case(name, *, B, S, num_heads, head_dim, use_mask,
                 heads_per_block, batch_block, key):
        H = num_heads * head_dim
        k_x, k_q, k_k, k_v, k_o, k_m = jax.random.split(key, 6)
        x = jax.random.normal(k_x, (B, S, H), dtype=jnp.float32)
        bound = 1.0 / math.sqrt(H)
        wq_t = jax.random.uniform(k_q, (H, H), jnp.float32, -bound, bound)
        wk_t = jax.random.uniform(k_k, (H, H), jnp.float32, -bound, bound)
        wv_t = jax.random.uniform(k_v, (H, H), jnp.float32, -bound, bound)
        wo_t = jax.random.uniform(k_o, (H, H), jnp.float32, -bound, bound)
        mask = None
        if use_mask:
            bits = jax.random.bernoulli(k_m, p=0.2, shape=(B, 1, S, S))
            mask = jnp.where(bits, jnp.float32(-1e9), jnp.float32(0.0))

        out = graphsgpt_self_attention(x, wq_t, wk_t, wv_t, wo_t, mask,
                                       num_heads=num_heads,
                                       heads_per_block=heads_per_block,
                                       batch_block=batch_block)
        out = jax.block_until_ready(out)
        ref = _reference(x, wq_t, wk_t, wv_t, wo_t, mask, num_heads)
        assert out.shape == (B, S, H)
        assert jnp.allclose(out, ref, atol=3e-3, rtol=3e-3), \
            f"{name}: mismatch vs reference"

    key = jax.random.PRNGKey(0)
    k1, k2, k3, k4 = jax.random.split(key, 4)

    # A: masked + unmasked, defaults (fused 2-head step, full-batch block).
    run_case("A-mask", B=2, S=8, num_heads=2, head_dim=128, use_mask=True,
             heads_per_block=None, batch_block=None, key=k1)
    run_case("A-nomask", B=2, S=8, num_heads=2, head_dim=128, use_mask=False,
             heads_per_block=None, batch_block=None, key=k2)
    # B: multiple head groups + multiple batch blocks (accumulation path).
    run_case("B-acc", B=2, S=16, num_heads=4, head_dim=128, use_mask=True,
             heads_per_block=2, batch_block=1, key=k3)
    # C: single-head-per-step path.
    run_case("C-hpb1", B=2, S=16, num_heads=2, head_dim=128, use_mask=False,
             heads_per_block=1, batch_block=2, key=k4)

    print("KERNEL_OK")
</pallas_src>

<mosaic_0001>
module attributes {stable_mosaic.version = 11 : i64} {
  func.func @_attn_kernel(%arg0: i32, %arg1: i32, %arg2: memref<2x8x256xf32, #tpu.memory_space<vmem>>, %arg3: memref<2x256x384xf32, #tpu.memory_space<vmem>>, %arg4: memref<2x128x256xf32, #tpu.memory_space<vmem>>, %arg5: memref<2x1x8x8xf32, #tpu.memory_space<vmem>>, %arg6: memref<2x8x256xf32, #tpu.memory_space<vmem>>, %arg7: memref<16x256xf32, #tpu.memory_space<vmem>>) attributes {dimension_semantics = [#tpu.dimension_semantics<parallel>, #tpu.dimension_semantics<arbitrary>], iteration_bounds = array<i64: 1, 1>, scalar_prefetch = 0 : i64, scratch_operands = 1 : i64, tpu.core_type = #tpu.core_type<tc>, window_params = [{transform_indices = @transform_0, window_bounds = array<i64: 2, 8, 256>}, {transform_indices = @transform_1, window_bounds = array<i64: 2, 256, 384>}, {transform_indices = @transform_2, window_bounds = array<i64: 2, 128, 256>}, {transform_indices = @transform_3, window_bounds = array<i64: 2, 1, 8, 8>}, {transform_indices = @transform_4, window_bounds = array<i64: 2, 8, 256>}]} {
    %c0 = arith.constant 0 : index
    %c0_0 = arith.constant 0 : index
    %c0_1 = arith.constant 0 : index
    %0 = vector.load %arg2[%c0, %c0_0, %c0_1] : memref<2x8x256xf32, #tpu.memory_space<vmem>>, vector<2x8x256xf32>
    %1 = vector.shape_cast %0 : vector<2x8x256xf32> to vector<16x256xf32>
    %c0_2 = arith.constant 0 : index
    %c0_3 = arith.constant 0 : index
    %c0_4 = arith.constant 0 : index
    %c0_5 = arith.constant 0 : index
    %2 = vector.load %arg5[%c0_2, %c0_3, %c0_4, %c0_5] : memref<2x1x8x8xf32, #tpu.memory_space<vmem>>, vector<2x1x8x8xf32>
    %3 = vector.shape_cast %2 : vector<2x1x8x8xf32> to vector<2x8x8xf32>
    %c0_6 = arith.constant 0 : index
    %c0_7 = arith.constant 0 : index
    %c0_8 = arith.constant 0 : index
    %4 = vector.load %arg3[%c0_6, %c0_7, %c0_8] : memref<2x256x384xf32, #tpu.memory_space<vmem>>, vector<1x256x384xf32>
    %5 = vector.shape_cast %4 : vector<1x256x384xf32> to vector<256x384xf32>
    %cst = arith.constant dense<0.000000e+00> : vector<16x384xf32>
    %6 = tpu.matmul %1, %5, %cst {dimension_numbers = #tpu.dot_dimension_numbers<[1], [0], [0], [1], [0, 0, 1, 1], [], []>} : vector<16x256xf32>, vector<256x384xf32>, vector<16x384xf32> -> vector<16x384xf32>
    %7 = vector.extract_strided_slice %6 {offsets = [0, 0], sizes = [16, 128], strides = [1, 1]} : vector<16x384xf32> to vector<16x128xf32>
    %cst_9 = arith.constant 0.0883883461 : f32
    %8 = vector.broadcast %cst_9 : f32 to vector<16x128xf32>
    %9 = arith.mulf %7, %8 : vector<16x128xf32>
    %10 = vector.shape_cast %9 : vector<16x128xf32> to vector<2x8x128xf32>
    %11 = vector.extract_strided_slice %6 {offsets = [0, 128], sizes = [16, 128], strides = [1, 1]} : vector<16x384xf32> to vector<16x128xf32>
    %12 = vector.shape_cast %11 : vector<16x128xf32> to vector<2x8x128xf32>
    %13 = vector.extract_strided_slice %6 {offsets = [0, 256], sizes = [16, 128], strides = [1, 1]} : vector<16x384xf32> to vector<16x128xf32>
    %14 = vector.shape_cast %13 : vector<16x128xf32> to vector<2x8x128xf32>
    "tpu.trace_start"() <{level = 10 : i32, message = "bqd,bkd->bqk"}> : () -> ()
    %cst_10 = arith.constant dense<0.000000e+00> : vector<2x8x8xf32>
    %15 = tpu.matmul %10, %12, %cst_10 {dimension_numbers = #tpu.dot_dimension_numbers<[2], [2], [1], [1], [0, 0, 0, 1, 1, 1], [0], [0]>} : vector<2x8x128xf32>, vector<2x8x128xf32>, vector<2x8x8xf32> -> vector<2x8x8xf32>
    "tpu.trace_stop"() : () -> ()
    %16 = arith.addf %15, %3 : vector<2x8x8xf32>
    %cst_11 = arith.constant -3.40282347E+38 : f32
    %17 = vector.broadcast %cst_11 : f32 to vector<2x8x8xf32>
    %18 = arith.maximumf %16, %17 : vector<2x8x8xf32>
    %cst_12 = arith.constant dense<0xFF800000> : vector<2x8xf32>
    %19 = vector.multi_reduction <maximumf>, %18, %cst_12 [2] : vector<2x8x8xf32> to vector<2x8xf32>
    %20 = vector.shape_cast %19 : vector<2x8xf32> to vector<2x8x1xf32>
    %21 = vector.broadcast %20 : vector<2x8x1xf32> to vector<2x8x8xf32>
    %22 = arith.subf %18, %21 : vector<2x8x8xf32>
    %23 = math.exp %22 : vector<2x8x8xf32>
    %cst_13 = arith.constant dense<0.000000e+00> : vector<2x8xf32>
    %24 = vector.multi_reduction <add>, %23, %cst_13 [2] : vector<2x8x8xf32> to vector<2x8xf32>
    %25 = vector.shape_cast %24 : vector<2x8xf32> to vector<2x8x1xf32>
    %26 = tpu.reciprocal %25 {approx = true} : vector<2x8x1xf32> -> vector<2x8x1xf32>
    %27 = vector.broadcast %26 : vector<2x8x1xf32> to vector<2x8x8xf32>
    %28 = arith.mulf %23, %27 : vector<2x8x8xf32>
    "tpu.trace_start"() <{level = 10 : i32, message = "bqk,bkd->bqd"}> : () -> ()
    %cst_14 = arith.constant dense<0.000000e+00> : vector<2x8x128xf32>
    %29 = tpu.matmul %28, %14, %cst_14 {dimension_numbers = #tpu.dot_dimension_numbers<[2], [1], [1], [2], [0, 0, 0, 1, 1, 2], [0], [0]>} : vector<2x8x8xf32>, vector<2x8x128xf32>, vector<2x8x128xf32> -> vector<2x8x128xf32>
    "tpu.trace_stop"() : () -> ()
    %c1 = arith.constant 1 : index
    %c0_15 = arith.constant 0 : index
    %c0_16 = arith.constant 0 : index
    %30 = vector.load %arg3[%c1, %c0_15, %c0_16] : memref<2x256x384xf32, #tpu.memory_space<vmem>>, vector<1x256x384xf32>
    %31 = vector.shape_cast %30 : vector<1x256x384xf32> to vector<256x384xf32>
    %cst_17 = arith.constant dense<0.000000e+00> : vector<16x384xf32>
    %32 = tpu.matmul %1, %31, %cst_17 {dimension_numbers = #tpu.dot_dimension_numbers<[1], [0], [0], [1], [0, 0, 1, 1], [], []>} : vector<16x256xf32>, vector<256x384xf32>, vector<16x384xf32> -> vector<16x384xf32>
    %33 = vector.extract_strided_slice %32 {offsets = [0, 0], sizes = [16, 128], strides = [1, 1]} : vector<16x384xf32> to vector<16x128xf32>
    %cst_18 = arith.constant 0.0883883461 : f32
    %34 = vector.broadcast %cst_18 : f32 to vector<16x128xf32>
    %35 = arith.mulf %33, %34 : vector<16x128xf32>
    %36 = vector.shape_cast %35 : vector<16x128xf32> to vector<2x8x128xf32>
    %37 = vector.extract_strided_slice %32 {offsets = [0, 128], sizes = [16, 128], strides = [1, 1]} : vector<16x384xf32> to vector<16x128xf32>
    %38 = vector.shape_cast %37 : vector<16x128xf32> to vector<2x8x128xf32>
    %39 = vector.extract_strided_slice %32 {offsets = [0, 256], sizes = [16, 128], strides = [1, 1]} : vector<16x384xf32> to vector<16x128xf32>
    %40 = vector.shape_cast %39 : vector<16x128xf32> to vector<2x8x128xf32>
    "tpu.trace_start"() <{level = 10 : i32, message = "bqd,bkd->bqk"}> : () -> ()
    %cst_19 = arith.constant dense<0.000000e+00> : vector<2x8x8xf32>
    %41 = tpu.matmul %36, %38, %cst_19 {dimension_numbers = #tpu.dot_dimension_numbers<[2], [2], [1], [1], [0, 0, 0, 1, 1, 1], [0], [0]>} : vector<2x8x128xf32>, vector<2x8x128xf32>, vector<2x8x8xf32> -> vector<2x8x8xf32>
    "tpu.trace_stop"() : () -> ()
    %42 = arith.addf %41, %3 : vector<2x8x8xf32>
    %cst_20 = arith.constant -3.40282347E+38 : f32
    %43 = vector.broadcast %cst_20 : f32 to vector<2x8x8xf32>
    %44 = arith.maximumf %42, %43 : vector<2x8x8xf32>
    %cst_21 = arith.constant dense<0xFF800000> : vector<2x8xf32>
    %45 = vector.multi_reduction <maximumf>, %44, %cst_21 [2] : vector<2x8x8xf32> to vector<2x8xf32>
    %46 = vector.shape_cast %45 : vector<2x8xf32> to vector<2x8x1xf32>
    %47 = vector.broadcast %46 : vector<2x8x1xf32> to vector<2x8x8xf32>
    %48 = arith.subf %44, %47 : vector<2x8x8xf32>
    %49 = math.exp %48 : vector<2x8x8xf32>
    %cst_22 = arith.constant dense<0.000000e+00> : vector<2x8xf32>
    %50 = vector.multi_reduction <add>, %49, %cst_22 [2] : vector<2x8x8xf32> to vector<2x8xf32>
    %51 = vector.shape_cast %50 : vector<2x8xf32> to vector<2x8x1xf32>
    %52 = tpu.reciprocal %51 {approx = true} : vector<2x8x1xf32> -> vector<2x8x1xf32>
    %53 = vector.broadcast %52 : vector<2x8x1xf32> to vector<2x8x8xf32>
    %54 = arith.mulf %49, %53 : vector<2x8x8xf32>
    "tpu.trace_start"() <{level = 10 : i32, message = "bqk,bkd->bqd"}> : () -> ()
    %cst_23 = arith.constant dense<0.000000e+00> : vector<2x8x128xf32>
    %55 = tpu.matmul %54, %40, %cst_23 {dimension_numbers = #tpu.dot_dimension_numbers<[2], [1], [1], [2], [0, 0, 0, 1, 1, 2], [0], [0]>} : vector<2x8x8xf32>, vector<2x8x128xf32>, vector<2x8x128xf32> -> vector<2x8x128xf32>
    "tpu.trace_stop"() : () -> ()
    %56 = tpu.concatenate %29, %55 in 2 : vector<2x8x128xf32>, vector<2x8x128xf32> -> vector<2x8x256xf32>
    %57 = vector.shape_cast %56 : vector<2x8x256xf32> to vector<16x256xf32>
    %c0_24 = arith.constant 0 : index
    %c0_25 = arith.constant 0 : index
    %c0_26 = arith.constant 0 : index
    %58 = vector.load %arg4[%c0_24, %c0_25, %c0_26] : memref<2x128x256xf32, #tpu.memory_space<vmem>>, vector<2x128x256xf32>
    %59 = vector.shape_cast %58 : vector<2x128x256xf32> to vector<256x256xf32>
    %cst_27 = arith.constant dense<0.000000e+00> : vector<16x256xf32>
    %60 = tpu.matmul %57, %59, %cst_27 {dimension_numbers = #tpu.dot_dimension_numbers<[1], [0], [0], [1], [0, 0, 1, 1], [], []>} : vector<16x256xf32>, vector<256x256xf32>, vector<16x256xf32> -> vector<16x256xf32>
    %c0_i32 = arith.constant 0 : i32
    %61 = arith.cmpi eq, %arg1, %c0_i32 : i32
    %62 = arith.extui %61 : i1 to i32
    %c0_i32_28 = arith.constant 0 : i32
    %63 = arith.cmpi ne, %62, %c0_i32_28 : i32
    scf.if %63 {
      %c0_33 = arith.constant 0 : index
      %c0_34 = arith.constant 0 : index
      %70 = vector.load %arg7[%c0_33, %c0_34] : memref<16x256xf32, #tpu.memory_space<vmem>>, vector<16x256xf32>
      tpu.vector_store %arg7[%c0_33, %c0_34], %60 {strides = array<i32>} : memref<16x256xf32, #tpu.memory_space<vmem>>, vector<16x256xf32>,
    } else {
    }
    %c0_i32_29 = arith.constant 0 : i32
    %64 = arith.cmpi sgt, %arg1, %c0_i32_29 : i32
    %65 = arith.extui %64 : i1 to i32
    %c0_i32_30 = arith.constant 0 : i32
    %66 = arith.cmpi ne, %65, %c0_i32_30 : i32
    scf.if %66 {
      %c0_33 = arith.constant 0 : index
      %c0_34 = arith.constant 0 : index
      %70 = vector.load %arg7[%c0_33, %c0_34] : memref<16x256xf32, #tpu.memory_space<vmem>>, vector<16x256xf32>
      %71 = arith.addf %70, %60 : vector<16x256xf32>
      %c0_35 = arith.constant 0 : index
      %c0_36 = arith.constant 0 : index
      %72 = vector.load %arg7[%c0_35, %c0_36] : memref<16x256xf32, #tpu.memory_space<vmem>>, vector<16x256xf32>
      tpu.vector_store %arg7[%c0_35, %c0_36], %71 {strides = array<i32>} : memref<16x256xf32, #tpu.memory_space<vmem>>, vector<16x256xf32>,
    } else {
    }
    %c0_i32_31 = arith.constant 0 : i32
    %67 = arith.cmpi eq, %arg1, %c0_i32_31 : i32
    %68 = arith.extui %67 : i1 to i32
    %c0_i32_32 = arith.constant 0 : i32
    %69 = arith.cmpi ne, %68, %c0_i32_32 : i32
    scf.if %69 {
      %c0_33 = arith.constant 0 : index
      %c0_34 = arith.constant 0 : index
      %70 = vector.load %arg7[%c0_33, %c0_34] : memref<16x256xf32, #tpu.memory_space<vmem>>, vector<16x256xf32>
      %71 = vector.shape_cast %70 : vector<16x256xf32> to vector<2x8x256xf32>
      %c0_35 = arith.constant 0 : index
      %c0_36 = arith.constant 0 : index
      %c0_37 = arith.constant 0 : index
      %72 = vector.load %arg6[%c0_35, %c0_36, %c0_37] : memref<2x8x256xf32, #tpu.memory_space<vmem>>, vector<2x8x256xf32>
      tpu.vector_store %arg6[%c0_35, %c0_36, %c0_37], %71 {strides = array<i32>} : memref<2x8x256xf32, #tpu.memory_space<vmem>>, vector<2x8x256xf32>,
    } else {
    }
    return
  }
  func.func @transform_0(%arg0: i32, %arg1: i32) -> (i32, i32, i32) {
    %c0_i32 = arith.constant 0 : i32
    %c0_i32_0 = arith.constant 0 : i32
    %c0_i32_1 = arith.constant 0 : i32
    return %arg0, %c0_i32, %c0_i32_0 : i32, i32, i32
  }
  func.func @transform_1(%arg0: i32, %arg1: i32) -> (i32, i32, i32) {
    %c0_i32 = arith.constant 0 : i32
    %c0_i32_0 = arith.constant 0 : i32
    %c0_i32_1 = arith.constant 0 : i32
    return %arg1, %c0_i32, %c0_i32_0 : i32, i32, i32
  }
  func.func @transform_2(%arg0: i32, %arg1: i32) -> (i32, i32, i32) {
    %c0_i32 = arith.constant 0 : i32
    %c0_i32_0 = arith.constant 0 : i32
    %c0_i32_1 = arith.constant 0 : i32
    return %arg1, %c0_i32, %c0_i32_0 : i32, i32, i32
  }
  func.func @transform_3(%arg0: i32, %arg1: i32) -> (i32, i32, i32, i32) {
    %c0_i32 = arith.constant 0 : i32
    %c0_i32_0 = arith.constant 0 : i32
    %c0_i32_1 = arith.constant 0 : i32
    %c0_i32_2 = arith.constant 0 : i32
    return %arg0, %c0_i32, %c0_i32_0, %c0_i32_1 : i32, i32, i32, i32
  }
  func.func @transform_4(%arg0: i32, %arg1: i32) -> (i32, i32, i32) {
    %c0_i32 = arith.constant 0 : i32
    %c0_i32_0 = arith.constant 0 : i32
    %c0_i32_1 = arith.constant 0 : i32
    return %arg0, %c0_i32, %c0_i32_0 : i32, i32, i32
  }
}

</mosaic_0001>

<bundles_post_ra>
// kernel: tpu_custom_call.1
= control target key start
LH: loop header
LB: loop body
LE: loop exit
PB: predicated region body
PF: predicated region fallthrough
CT: control target
= control target key end

     0   :  { %9 = vsyncpa [#allocation4], 0  ;;  %s2123_s0 = inlined_call_operand.hbm [shape: f32[2,8,256], index: 0, kind: input, shape index: {}]   ;;  %s2124_s1 = inlined_call_operand.hbm [shape: f32[2,256,384], index: 1, kind: input, shape index: {}]   ;;  %s2125_s2 = inlined_call_operand.hbm [shape: f32[2,128,256], index: 2, kind: input, shape index: {}]   ;;  %s2126_s3 = inlined_call_operand.hbm [shape: f32[2,1,8,8], index: 3, kind: input, shape index: {}]   ;;  %s2127_s4 = inlined_call_operand.hbm [shape: f32[2,8,256], index: 4, kind: output, shape index: {}]  }
   0x1   :  { %10 = vsyncpa [#allocation7], 0 }
   0x2   :  { %11 = vsyncpa [#allocation10], 0 }
   0x3   :  { %12 = vsyncpa [#allocation5], 0  ;;  %s1935_s15 = smov [#allocation6]   ;;  %s1817_s19 = scalar_lea.hbm %s2124_s1, 24576 }
   0x4   :  { %s30_s16 = sshll.u32 %s1935_s15, 4  ;;  %p1818_p0 = scmp.ne.s32.totalorder %s2124_s1, %s1817_s19  ;;  %s31_s16 = int_to_ptr.vmem [resolvable:$true] %s30_s16 }
   0x5   :  { %p1821_p1 = scmp.lt.u32.totalorder %s1817_s19, %s2124_s1 }
   0x7   :  { %p1823_p2 = pnand %p1821_p1, %p1818_p0 }
   0x9   :  { %1826 = shalt.err (!%p1823_p2)
}
   0xa   :  { %s1827_s24 = scalar_lea.vmem %s31_s16, 24576  ;;  %p1832_p4 = scmp.lt.s32.totalorder %s31_s16, %s31_s16 }
   0xb   :  { %p1828_p3 = scmp.ne.s32.totalorder %s31_s16, %s1827_s24  ;;  %p1833_p5 = scmp.lt.s32.totalorder %s1827_s24, %s1827_s24 }
   0xd   :  { %p1834_p6 = por %p1833_p5, %p1832_p4 }
   0xf   :  { %p1835_p7 = pnand %p1834_p6, %p1828_p3 }
  0x11   :  { %1838 = shalt.err (!%p1835_p7)
}
  0x12   :  { %s1936_s25 = smov 384   ;;  %s1937_s26 = smov 24  }
  0x13   :  { %36 = dma.hbm_to_vmem [thread:$0]  %s2124_s1, 24576, %s31_s16, [#allocation7], %s1936_s25, %s1936_s25, %s1937_s26  }
  0x14   :  { %s1938_s29 = smov [#allocation3]   ;;  %s1839_s7 = scalar_lea.hbm %s2123_s0, 512 }
  0x15   :  { %s18_s30 = sshll.u32 %s1938_s29, 4  ;;  %p1840_p8 = scmp.ne.s32.totalorder %s2123_s0, %s1839_s7  ;;  %s19_s30 = int_to_ptr.vmem [resolvable:$true] %s18_s30 }
  0x16   :  { %p1843_p9 = scmp.lt.u32.totalorder %s1839_s7, %s2123_s0 }
  0x18   :  { %p1845_p10 = pnand %p1843_p9, %p1840_p8 }
  0x1a   :  { %1848 = shalt.err (!%p1845_p10)
}
  0x1b   :  { %s1849_s12 = scalar_lea.vmem %s19_s30, 512  ;;  %p1854_p12 = scmp.lt.s32.totalorder %s19_s30, %s19_s30 }
  0x1c   :  { %p1850_p11 = scmp.ne.s32.totalorder %s19_s30, %s1849_s12  ;;  %p1855_p13 = scmp.lt.s32.totalorder %s1849_s12, %s1849_s12 }
  0x1e   :  { %p1856_p0 = por %p1855_p13, %p1854_p12 }
  0x20   :  { %p1857_p1 = pnand %p1856_p0, %p1850_p11 }
  0x22   :  { %1860 = shalt.err (!%p1857_p1)
}
  0x23   :  { %s1939_s1 = smov 256   ;;  %s1940_s13 = smov 16  }
  0x24   :  { %24 = dma.hbm_to_vmem [thread:$0]  %s2123_s0, 512, %s19_s30, [#allocation4], %s1939_s1, %s1939_s1, %s1940_s13  }
  0x25   :  { %s1941_s16 = smov [#allocation8]   ;;  %s1942_s18 = smov [#allocation9]  }
  0x26   :  { %s42_s17 = sshll.u32 %s1941_s16, 4  ;;  %s54_s19 = sshll.u32 %s1942_s18, 4  ;;  %s43_s17 = int_to_ptr.vmem [resolvable:$true] %s42_s17  ;;  %s2000_s19 = int_to_ptr.vmem [resolvable:$true] %s54_s19 }
  0x27   :  { %s1861_s22 = scalar_lea.hbm %s2125_s2, 8192 }
  0x28   :  { %p1862_p2 = scmp.ne.s32.totalorder %s2125_s2, %s1861_s22  ;;  %p1865_p3 = scmp.lt.u32.totalorder %s1861_s22, %s2125_s2 }
  0x2a   :  { %p1867_p4 = pnand %p1865_p3, %p1862_p2 }
  0x2c   :  { %1870 = shalt.err (!%p1867_p4)
}
  0x2d   :  { %s1871_s0 = scalar_lea.vmem %s43_s17, 8192  ;;  %p1876_p6 = scmp.lt.s32.totalorder %s43_s17, %s43_s17 }
  0x2e   :  { %p1872_p5 = scmp.ne.s32.totalorder %s43_s17, %s1871_s0  ;;  %p1877_p7 = scmp.lt.s32.totalorder %s1871_s0, %s1871_s0 }
  0x30   :  { %p1878_p8 = por %p1877_p7, %p1876_p6 }
  0x32   :  { %p1879_p9 = pnand %p1878_p8, %p1872_p5 }
  0x34   :  { %1882 = shalt.err (!%p1879_p9)
}
  0x35   :  { %48 = dma.hbm_to_vmem [thread:$0]  %s2125_s2, 8192, %s43_s17, [#allocation7], %s1939_s1, %s1939_s1, %s1940_s13  }
  0x36   :  { %s1883_s5 = scalar_lea.hbm %s2126_s3, 256 }
  0x37   :  { %p1884_p10 = scmp.ne.s32.totalorder %s2126_s3, %s1883_s5  ;;  %p1887_p11 = scmp.lt.u32.totalorder %s1883_s5, %s2126_s3 }
  0x39   :  { %p1889_p12 = pnand %p1887_p11, %p1884_p10 }
  0x3b   :  { %1892 = shalt.err (!%p1889_p12)
}
  0x3c   :  { %s1893_s10 = scalar_lea.vmem %s2000_s19, 256  ;;  %p1898_p0 = scmp.lt.s32.totalorder %s2000_s19, %s2000_s19 }
  0x3d   :  { %p1894_p13 = scmp.ne.s32.totalorder %s2000_s19, %s1893_s10  ;;  %p1899_p1 = scmp.lt.s32.totalorder %s1893_s10, %s1893_s10 }
  0x3f   :  { %p1900_p2 = por %p1899_p1, %p1898_p0 }
  0x41   :  { %p1901_p3 = pnand %p1900_p2, %p1894_p13 }
  0x43   :  { %1904 = shalt.err (!%p1901_p3)
}
  0x44   :  { %s1943_s2 = smov 128   ;;  %s1944_s11 = smov 8  }
  0x45   :  { %60 = dma.hbm_to_vmem [thread:$0]  %s2126_s3, 256, %s2000_s19, [#allocation10], %s1943_s2, %s1943_s2, %s1944_s11  }
  0x46   :  { %1927 = dma.done.wait [#allocation4], 512  }
  0x47   :  { %1928 = vsyncadd [#allocation4], 4294966784 }
  0x48   :  { %1929 = dma.done.wait [#allocation7], 32768  }
  0x49   :  { %1930 = vsyncadd [#allocation7], 4294934528 }
  0x4a   :  { %1931 = dma.done.wait [#allocation10], 256  }
  0x4b   :  { %1932 = vsyncadd [#allocation10], 4294967040  ;;  %v80_v0 = vld [vmem:[#allocation6 + $0x8] sm:$0xff]  ;;  %v83_v1 = vld [vmem:[#allocation6 + $0x20] sm:$0xff]  ;;  %vm1946_vm0 = vmmov 0   ;;  %vm471_vm1 = vcmask 64512  }
  0x4c   :  { %v79_v2 = vld [vmem:[#allocation6] sm:$0xff]  ;;  %v1532_v3 = vpack.c.bf16 %v83_v1, %v80_v0  ;;  %v82_v4 = vld [vmem:[#allocation6 + $0x18] sm:$0xff]  ;;  %v89_v6 = vld [vmem:[#allocation6 + $0x50] sm:$0xff]  ;;  %s1947_s3 = smov [#allocation11]  }
  0x4d   :  { %v86_v5 = vld [vmem:[#allocation6 + $0x38] sm:$0xff]  ;;  %v1534_v7 = vpack.c.bf16 %v82_v4, %v79_v2  ;;  %v85_v9 = vld [vmem:[#allocation6 + $0x30] sm:$0xff]  ;;  %v88_v10 = vld [vmem:[#allocation6 + $0x48] sm:$0xff]  ;;  %s1382_s15 = sshll.u32 %s1947_s3, 4  ;;  %s1383_s15 = int_to_ptr.vmem [resolvable:$true] %s1382_s15 }
  0x4e   :  { %v1536_v8 = vpack.c.bf16 %v89_v6, %v86_v5  ;;  %v92_v11 = vld [vmem:[#allocation6 + $0x68] sm:$0xff]  ;;  %1533 = vmatprep.subr.bf16.mxu0 %v1532_v3  ;;  %v95_v12 = vld [vmem:[#allocation6 + $0x80] sm:$0xff]  ;;  %v1538_v13 = vpack.c.bf16 %v88_v10, %v85_v9  ;;  %v94_v16 = vld [vmem:[#allocation6 + $0x78] sm:$0xff]  ;;  %s1905_s16 = scalar_lea.vmem %s1383_s15, 512  ;;  %p1910_p5 = scmp.lt.s32.totalorder %s1383_s15, %s1383_s15 }
  0x4f   :  { %1535 = vmatpush1.bf16.msra.mxu0 %v1534_v7  ;;  %v1540_v14 = vpack.c.bf16 %v95_v12, %v92_v11  ;;  %v91_v15 = vld [vmem:[#allocation6 + $0x60] sm:$0xff]  ;;  %v98_v17 = vld [vmem:[#allocation6 + $0x98] sm:$0xff]  ;;  %v101_v18 = vld [vmem:[#allocation6 + $0xb0] sm:$0xff]  ;;  %p1906_p4 = scmp.ne.s32.totalorder %s1383_s15, %s1905_s16  ;;  %p1911_p6 = scmp.lt.s32.totalorder %s1905_s16, %s1905_s16 }
  0x50   :  { %1537 = vmatprep.subr.bf16.mxu0 %v1536_v8  ;;  %v1542_v19 = vpack.c.bf16 %v94_v16, %v91_v15  ;;  %v1544_v20 = vpack.c.bf16 %v101_v18, %v98_v17  ;;  %v97_v21 = vld [vmem:[#allocation6 + $0x90] sm:$0xff]  ;;  %v100_v22 = vld [vmem:[#allocation6 + $0xa8] sm:$0xff]  ;;  %v107_v24 = vld [vmem:[#allocation6 + $0xe0] sm:$0xff] }
  0x51   :  { %v104_v23 = vld [vmem:[#allocation6 + $0xc8] sm:$0xff]  ;;  %v1546_v25 = vpack.c.bf16 %v100_v22, %v97_v21  ;;  %v103_v27 = vld [vmem:[#allocation6 + $0xc0] sm:$0xff]  ;;  %v106_v28 = vld [vmem:[#allocation6 + $0xd8] sm:$0xff]  ;;  %p1912_p7 = por %p1911_p6, %p1910_p5 }
  0x52   :  { %v1548_v26 = vpack.c.bf16 %v107_v24, %v104_v23  ;;  %v110_v29 = vld [vmem:[#allocation6 + $0xf8] sm:$0xff]  ;;  %v113_v30 = vld [vmem:[#allocation6 + $0x110] sm:$0xff]  ;;  %v1550_v31 = vpack.c.bf16 %v106_v28, %v103_v27  ;;  %v112_v34 = vld [vmem:[#allocation6 + $0x108] sm:$0xff] }
  0x53   :  { %1539 = vmatpush1.bf16.msra.mxu0 %v1538_v13  ;;  %v1552_v32 = vpack.c.bf16 %v113_v30, %v110_v29  ;;  %v109_v33 = vld [vmem:[#allocation6 + $0xf0] sm:$0xff]  ;;  %v116_v35 = vld [vmem:[#allocation6 + $0x128] sm:$0xff]  ;;  %v119_v36 = vld [vmem:[#allocation6 + $0x140] sm:$0xff]  ;;  %p1913_p8 = pnand %p1912_p7, %p1906_p4 }
  0x54   :  { %1541 = vmatprep.subr.bf16.mxu0 %v1540_v14  ;;  %v1554_v37 = vpack.c.bf16 %v112_v34, %v109_v33  ;;  %v1556_v38 = vpack.c.bf16 %v119_v36, %v116_v35  ;;  %v115_v39 = vld [vmem:[#allocation6 + $0x120] sm:$0xff]  ;;  %v118_v40 = vld [vmem:[#allocation6 + $0x138] sm:$0xff]  ;;  %v2034_v41 = vld [vmem:[#allocation3 + $0x8] sm:$0xff] }
  0x55   :  { %v122_v42 = vld [vmem:[#allocation6 + $0x158] sm:$0xff]  ;;  %v125_v43 = vld [vmem:[#allocation6 + $0x170] sm:$0xff]  ;;  %239 = vmatprep.mubr.f32.mxu0 %v2034_v41  ;;  %316 = vmatprep.mubr.f32.mxu1 %v2034_v41  ;;  %v124_v46 = vld [vmem:[#allocation6 + $0x168] sm:$0xff]  ;;  %v1558_v50 = vpack.c.bf16 %v118_v40, %v115_v39 }
  0x56   :  { %v129_v44 = vld [vmem:[#allocation6 + $0x190] sm:$0xff]  ;;  %v132_v47 = vld [vmem:[#allocation6 + $0x1a8] sm:$0xff]  ;;  %v135_v53 = vld [vmem:[#allocation6 + $0x1c0] sm:$0xff]  ;;  %v1560_v56 = vpack.c.bf16 %v125_v43, %v122_v42 }
  0x57   :  { %1543 = vmatpush1.bf16.msra.mxu0 %v1542_v19  ;;  %v121_v45 = vld [vmem:[#allocation6 + $0x150] sm:$0xff]  ;;  %v84_v49 = vld [vmem:[#allocation6 + $0x28] sm:$0xff]  ;;  %v1596_v51 = vpack.c.bf16 %v132_v47, %v129_v44  ;;  %v138_v54 = vld [vmem:[#allocation6 + $0x1d8] sm:$0xff] }
  0x58   :  { %1545 = vmatprep.subr.bf16.mxu0 %v1544_v20  ;;  %v81_v48 = vld [vmem:[#allocation6 + $0x10] sm:$0xff]  ;;  %v87_v55 = vld [vmem:[#allocation6 + $0x40] sm:$0xff]  ;;  %v1600_v57 = vpack.c.bf16 %v138_v54, %v135_v53  ;;  %v90_v58 = vld [vmem:[#allocation6 + $0x58] sm:$0xff]  ;;  %v1562_v0 = vpack.c.bf16 %v124_v46, %v121_v45 }
  0x59   :  { %v1598_v52 = vpack.c.bf16 %v84_v49, %v81_v48  ;;  %v141_v59 = vld [vmem:[#allocation6 + $0x1f0] sm:$0xff]  ;;  %v144_v60 = vld [vmem:[#allocation6 + $0x208] sm:$0xff]  ;;  %v131_v62 = vld [vmem:[#allocation6 + $0x1a0] sm:$0xff]  ;;  %1597 = vmatprep.subr.bf16.mxu1 %v1596_v51  ;;  %v1602_v63 = vpack.c.bf16 %v90_v58, %v87_v55 }
  0x5a   :  { %v128_v61 = vld [vmem:[#allocation6 + $0x188] sm:$0xff]  ;;  %v127_v1 = vld [vmem:[#allocation6 + $0x180] sm:$0xff]  ;;  %v1604_v2 = vpack.c.bf16 %v144_v60, %v141_v59  ;;  %v93_v3 = vld [vmem:[#allocation6 + $0x70] sm:$0xff] }
  0x5b   :  { %1547 = vmatpush1.bf16.msra.mxu0 %v1546_v25  ;;  %1599 = vmatpush3.bf16.msra.mxu1 %v1598_v52  ;;  %v96_v4 = vld [vmem:[#allocation6 + $0x88] sm:$0xff]  ;;  %v1564_v5 = vpack.c.bf16 %v131_v62, %v128_v61  ;;  %v130_v6 = vld [vmem:[#allocation6 + $0x198] sm:$0xff]  ;;  %v147_v7 = vld [vmem:[#allocation6 + $0x220] sm:$0xff] }
  0x5c   :  { %1549 = vmatprep.subr.bf16.mxu0 %v1548_v26  ;;  %1601 = vmatprep.subr.bf16.mxu1 %v1600_v57  ;;  %v150_v8 = vld [vmem:[#allocation6 + $0x238] sm:$0xff]  ;;  %v137_v10 = vld [vmem:[#allocation6 + $0x1d0] sm:$0xff]  ;;  %v1606_v11 = vpack.c.bf16 %v96_v4, %v93_v3  ;;  %v1566_v12 = vpack.c.bf16 %v130_v6, %v127_v1  ;;  %v99_v15 = vld [vmem:[#allocation6 + $0xa0] sm:$0xff] }
  0x5d   :  { %v134_v9 = vld [vmem:[#allocation6 + $0x1b8] sm:$0xff]  ;;  %v133_v13 = vld [vmem:[#allocation6 + $0x1b0] sm:$0xff]  ;;  %v1608_v14 = vpack.c.bf16 %v150_v8, %v147_v7  ;;  %v136_v18 = vld [vmem:[#allocation6 + $0x1c8] sm:$0xff] }
  0x5e   :  { %v102_v16 = vld [vmem:[#allocation6 + $0xb8] sm:$0xff]  ;;  %v1568_v17 = vpack.c.bf16 %v137_v10, %v134_v9  ;;  %v153_v19 = vld [vmem:[#allocation6 + $0x250] sm:$0xff]  ;;  %v156_v20 = vld [vmem:[#allocation6 + $0x268] sm:$0xff]  ;;  %v1570_v24 = vpack.c.bf16 %v136_v18, %v133_v13 }
  0x5f   :  { %1551 = vmatpush1.bf16.msra.mxu0 %v1550_v31  ;;  %1603 = vmatpush3.bf16.msra.mxu1 %v1602_v63  ;;  %v140_v21 = vld [vmem:[#allocation6 + $0x1e8] sm:$0xff]  ;;  %v143_v22 = vld [vmem:[#allocation6 + $0x200] sm:$0xff]  ;;  %v1610_v23 = vpack.c.bf16 %v102_v16, %v99_v15  ;;  %v1612_v26 = vpack.c.bf16 %v156_v20, %v153_v19  ;;  %v105_v27 = vld [vmem:[#allocation6 + $0xd0] sm:$0xff] }
  0x60   :  { %1553 = vmatprep.subr.bf16.mxu0 %v1552_v32  ;;  %1605 = vmatprep.subr.bf16.mxu1 %v1604_v2  ;;  %v139_v25 = vld [vmem:[#allocation6 + $0x1e0] sm:$0xff]  ;;  %v108_v28 = vld [vmem:[#allocation6 + $0xe8] sm:$0xff]  ;;  %v1572_v29 = vpack.c.bf16 %v143_v22, %v140_v21  ;;  %v142_v30 = vld [vmem:[#allocation6 + $0x1f8] sm:$0xff]  ;;  %v1945_v21 = vmov 0.0  }
  0x61   :  { %v159_v31 = vld [vmem:[#allocation6 + $0x280] sm:$0xff]  ;;  %v162_v32 = vld [vmem:[#allocation6 + $0x298] sm:$0xff]  ;;  %v149_v34 = vld [vmem:[#allocation6 + $0x230] sm:$0xff]  ;;  %v1614_v35 = vpack.c.bf16 %v108_v28, %v105_v27  ;;  %v1574_v36 = vpack.c.bf16 %v142_v30, %v139_v25 }
  0x62   :  { %v146_v33 = vld [vmem:[#allocation6 + $0x218] sm:$0xff]  ;;  %v111_v39 = vld [vmem:[#allocation6 + $0x100] sm:$0xff]  ;;  %v148_v43 = vld [vmem:[#allocation6 + $0x228] sm:$0xff] }
  0x63   :  { %1555 = vmatpush1.bf16.msra.mxu0 %v1554_v37  ;;  %1607 = vmatpush3.bf16.msra.mxu1 %v1606_v11  ;;  %v145_v37 = vld [vmem:[#allocation6 + $0x210] sm:$0xff]  ;;  %v114_v40 = vld [vmem:[#allocation6 + $0x118] sm:$0xff]  ;;  %v1576_v42 = vpack.c.bf16 %v149_v34, %v146_v33  ;;  %v168_v45 = vld [vmem:[#allocation6 + $0x2c8] sm:$0xff] }
  0x64   :  { %1557 = vmatprep.subr.bf16.mxu0 %v1556_v38  ;;  %1609 = vmatprep.subr.bf16.mxu1 %v1608_v14  ;;  %v1616_v38 = vpack.c.bf16 %v162_v32, %v159_v31  ;;  %v165_v44 = vld [vmem:[#allocation6 + $0x2b0] sm:$0xff]  ;;  %v152_v46 = vld [vmem:[#allocation6 + $0x248] sm:$0xff]  ;;  %v155_v47 = vld [vmem:[#allocation6 + $0x260] sm:$0xff]  ;;  %v1618_v48 = vpack.c.bf16 %v114_v40, %v111_v39  ;;  %v1578_v49 = vpack.c.bf16 %v148_v43, %v145_v37 }
  0x65   :  { %v1620_v51 = vpack.c.bf16 %v168_v45, %v165_v44  ;;  %v117_v52 = vld [vmem:[#allocation6 + $0x130] sm:$0xff]  ;;  %v120_v53 = vld [vmem:[#allocation6 + $0x148] sm:$0xff]  ;;  %v1580_v54 = vpack.c.bf16 %v155_v47, %v152_v46  ;;  %v154_v55 = vld [vmem:[#allocation6 + $0x258] sm:$0xff] }
  0x66   :  { %v174_v57 = vld [vmem:[#allocation6 + $0x2f8] sm:$0xff]  ;;  %v161_v59 = vld [vmem:[#allocation6 + $0x290] sm:$0xff]  ;;  %v1622_v60 = vpack.c.bf16 %v120_v53, %v117_v52  ;;  %v123_v63 = vld [vmem:[#allocation6 + $0x160] sm:$0xff] }
  0x67   :  { %1559 = vmatpush1.bf16.msra.mxu0 %v1558_v50  ;;  %1611 = vmatpush3.bf16.msra.mxu1 %v1610_v23  ;;  %v151_v50 = vld [vmem:[#allocation6 + $0x240] sm:$0xff]  ;;  %v158_v58 = vld [vmem:[#allocation6 + $0x278] sm:$0xff]  ;;  %v157_v2 = vld [vmem:[#allocation6 + $0x270] sm:$0xff] }
  0x68   :  { %1561 = vmatprep.subr.bf16.mxu0 %v1560_v56  ;;  %1613 = vmatprep.subr.bf16.mxu1 %v1612_v26  ;;  %v171_v56 = vld [vmem:[#allocation6 + $0x2e0] sm:$0xff]  ;;  %v1582_v61 = vpack.c.bf16 %v154_v55, %v151_v50  ;;  %v1584_v1 = vpack.c.bf16 %v161_v59, %v158_v58  ;;  %v160_v3 = vld [vmem:[#allocation6 + $0x288] sm:$0xff]  ;;  %v166_v10 = vld [vmem:[#allocation6 + $0x2b8] sm:$0xff] }
  0x69   :  { %v1624_v62 = vpack.c.bf16 %v174_v57, %v171_v56  ;;  %v164_v4 = vld [vmem:[#allocation6 + $0x2a8] sm:$0xff]  ;;  %v1586_v7 = vpack.c.bf16 %v160_v3, %v157_v2  ;;  %v163_v9 = vld [vmem:[#allocation6 + $0x2a0] sm:$0xff]  ;;  %v170_v11 = vld [vmem:[#allocation6 + $0x2d8] sm:$0xff] }
  0x6a   :  { %v1590_v13 = vpack.c.bf16 %v166_v10, %v163_v9  ;;  %v169_v15 = vld [vmem:[#allocation6 + $0x2d0] sm:$0xff]  ;;  %v172_v16 = vld [vmem:[#allocation6 + $0x2e8] sm:$0xff]  ;;  %v2040_v18 = vld [vmem:[#allocation3 + $0x18] sm:$0xff] }
  0x6b   :  { %1563 = vmatpush1.bf16.msra.mxu0 %v1562_v0  ;;  %1615 = vmatpush3.bf16.msra.mxu1 %v1614_v35  ;;  %v126_v0 = vld [vmem:[#allocation6 + $0x178] sm:$0xff]  ;;  %v1594_v19 = vpack.c.bf16 %v172_v16, %v169_v15  ;;  %v2044_v20 = vld [vmem:[#allocation3 + $0x10] sm:$0xff]  ;;  %v2063_v34 = vld [vmem:[#allocation9] sm:$0xff] }
  0x6c   :  { %1565 = vmatprep.subr.bf16.mxu0 %v1564_v5  ;;  %1617 = vmatprep.subr.bf16.mxu1 %v1616_v38  ;;  %v167_v5 = vld [vmem:[#allocation6 + $0x2c0] sm:$0xff]  ;;  %v1626_v6 = vpack.c.bf16 %v126_v0, %v123_v63  ;;  %v2066_v38 = vld [vmem:[#allocation9 + $0x8] sm:$0xff]  ;;  %v648_v2 = vld [vmem:[#allocation6 + $0x338] sm:$0xff] }
  0x6d   :  { %v1588_v8 = vpack.c.bf16 %v167_v5, %v164_v4  ;;  %v642_v59 = vld [vmem:[#allocation6 + $0x308] sm:$0xff]  ;;  %v641_v0 = vld [vmem:[#allocation6 + $0x300] sm:$0xff]  ;;  %v651_v3 = vld [vmem:[#allocation6 + $0x350] sm:$0xff] }
  0x6e   :  { %v650_v9 = vld [vmem:[#allocation6 + $0x348] sm:$0xff]  ;;  %v656_v15 = vld [vmem:[#allocation6 + $0x378] sm:$0xff] }
  0x6f   :  { %1567 = vmatpush1.bf16.msra.mxu0 %v1566_v12  ;;  %1619 = vmatpush3.bf16.msra.mxu1 %v1618_v48  ;;  %v173_v12 = vld [vmem:[#allocation6 + $0x2f0] sm:$0xff]  ;;  %v654_v10 = vld [vmem:[#allocation6 + $0x368] sm:$0xff]  ;;  %v660_v16 = vld [vmem:[#allocation6 + $0x398] sm:$0xff] }
  0x70   :  { %1569 = vmatprep.subr.bf16.mxu0 %v1568_v17  ;;  %1621 = vmatprep.subr.bf16.mxu1 %v1620_v51  ;;  %v1592_v14 = vpack.c.bf16 %v173_v12, %v170_v11  ;;  %v2038_v17 = vld [vmem:[#allocation3] sm:$0xff] }
  0x71   :  { %v657_v11 = vld [vmem:[#allocation6 + $0x380] sm:$0xff] }
  0x73   :  { %1571 = vmatpush1.bf16.msra.mxu0 %v1570_v24  ;;  %1623 = vmatpush3.bf16.msra.mxu1 %v1622_v60  ;;  %v645_v60 = vld [vmem:[#allocation6 + $0x320] sm:$0xff] }
  0x74   :  { %1573 = vmatprep.subr.bf16.mxu0 %v1572_v29  ;;  %1625 = vmatprep.subr.bf16.mxu1 %v1624_v62  ;;  %v1628_v63 = vpack.c.bf16 %v645_v60, %v642_v59  ;;  %v696_v59 = vld [vmem:[#allocation6 + $0x4b8] sm:$0xff]  ;;  %v699_v60 = vld [vmem:[#allocation6 + $0x4d0] sm:$0xff] }
  0x77   :  { %1575 = vmatpush1.bf16.msra.mxu0 %v1574_v36  ;;  %1627 = vmatpush3.bf16.msra.mxu1 %v1626_v6 }
  0x78   :  { %1577 = vmatprep.subr.bf16.mxu0 %v1576_v42  ;;  %1492 = vmatprep.subr.mxu1 %v1945_v21 }
  0x7a   :  { %317 = vmatmul.mubr.f32.vlgmr.msra.gmra.mrb[0].mxu1 %v2038_v17 }
  0x7b   :  { %1579 = vmatpush1.bf16.msra.mxu0 %v1578_v49  ;;  %321 = vmatprep.mubr.f32.mxu1 %v2040_v18 }
  0x7c   :  { %1581 = vmatprep.subr.bf16.mxu0 %v1580_v54 }
  0x7e   :  { %322 = vmatmul.mubr.f32.gmra.mrb[2].mxu1 %v2044_v20 }
  0x7f   :  { %1583 = vmatpush1.bf16.msra.mxu0 %v1582_v61  ;;  %1494 = vmatprep.mubr.msk.f32.mxu1 %vm1946_vm0, %v1945_v21 }
  0x80   :  { %1585 = vmatprep.subr.bf16.mxu0 %v1584_v1  ;;  %v644_v1 = vld [vmem:[#allocation6 + $0x318] sm:$0xff] }
  0x81   :  { %v1630_v5 = vpack.c.bf16 %v644_v1, %v641_v0  ;;  %v698_v0 = vld [vmem:[#allocation6 + $0x4c8] sm:$0xff] }
  0x82   :  { %v702_v1 = vld [vmem:[#allocation6 + $0x4e8] sm:$0xff] }
  0x83   :  { %1587 = vmatpush1.bf16.msra.mxu0 %v1586_v7  ;;  %v1632_v7 = vpack.c.bf16 %v651_v3, %v648_v2  ;;  %v705_v2 = vld [vmem:[#allocation6 + $0x500] sm:$0xff] }
  0x84   :  { %1589 = vmatprep.subr.bf16.mxu0 %v1588_v8  ;;  %v647_v8 = vld [vmem:[#allocation6 + $0x330] sm:$0xff] }
  0x85   :  { %v1634_v12 = vpack.c.bf16 %v650_v9, %v647_v8  ;;  %v711_v8 = vld [vmem:[#allocation6 + $0x530] sm:$0xff] }
  0x87   :  { %1591 = vmatpush1.bf16.msra.mxu0 %v1590_v13  ;;  %v1636_v13 = vpack.c.bf16 %v657_v11, %v654_v10  ;;  %v707_v11 = vld [vmem:[#allocation6 + $0x510] sm:$0xff] }
  0x88   :  { %1593 = vmatprep.subr.bf16.mxu0 %v1592_v14  ;;  %v653_v14 = vld [vmem:[#allocation6 + $0x360] sm:$0xff] }
  0x8b   :  { %1595 = vmatpush1.bf16.msra.mxu0 %v1594_v19  ;;  %v663_v19 = vld [vmem:[#allocation6 + $0x3b0] sm:$0xff] }
  0x8c   :  { %1512 = vmatprep.subr.mxu0 %v1945_v21 }
  0x8e   :  { %240 = vmatmul.mubr.f32.vlgmr.msra.gmra.mrb[0].mxu0 %v2038_v17 }
  0x8f   :  { %245 = vmatprep.mubr.f32.mxu0 %v2040_v18 }
  0x92   :  { %246 = vmatmul.mubr.f32.gmra.mrb[2].mxu0 %v2044_v20 }
  0x93   :  { %1514 = vmatprep.mubr.msk.f32.mxu0 %vm1946_vm0, %v1945_v21 }
 0x14d   :  { %v1432_v22 = vpop.f32.mrb[0].mxu1 }
 0x14e   :  { %v1433_v23 = vpop.f32.mrb[1].mxu1 }
 0x14f   :  { %v1434_v24 = vadd.f32 %v1433_v23, %v1432_v22  ;;  %v1638_v22 = vpack.c.bf16 %v656_v15, %v653_v14  ;;  %v1640_v23 = vpack.c.bf16 %v663_v19, %v660_v16  ;;  %v717_v14 = vld [vmem:[#allocation6 + $0x560] sm:$0xff] }
 0x150   :  { %v713_v19 = vld [vmem:[#allocation6 + $0x540] sm:$0xff] }
 0x151   :  { %v1435_v25 = vpop.f32.mrb[2].mxu1 }
 0x152   :  { %v1436_v26 = vpop.f32.mrb[3].mxu1 }
 0x153   :  { %v1437_v27 = vadd.f32 %v1436_v26, %v1435_v25  ;;  %v662_v25 = vld [vmem:[#allocation6 + $0x3a8] sm:$0xff] }
 0x154   :  { %v666_v26 = vld [vmem:[#allocation6 + $0x3c8] sm:$0xff] }
 0x161   :  { %v241_v28 = vpop.f32.mrb[0].mxu0 }
 0x162   :  { %v243_v29 = vpop.f32.mrb[1].mxu0  ;;  %v327_v30 = vmul.f32 0.088388346, %v241_v28 }
 0x163   :  { %1493 = vmatpush3.xpose.msra.mxu1 %v243_v29 }
 0x164   :  { %1497 = vmatprep.subr.mxu1 %v1945_v21 }
 0x165   :  { %v247_v31 = vpop.f32.mrb[2].mxu0 }
 0x166   :  { %v249_v32 = vpop.f32.mrb[3].mxu0  ;;  %1495 = vmatmul.mubr.f32.vlgmr.msra.gmra.mrb[4].mxu1 %v327_v30  ;;  %v328_v33 = vmul.f32 0.088388346, %v247_v31  ;;  %v665_v30 = vld [vmem:[#allocation6 + $0x3c0] sm:$0xff]  ;;  %v668_v31 = vld [vmem:[#allocation6 + $0x3d8] sm:$0xff] }
 0x167   :  { %1498 = vmatpush3.xpose.msra.mxu1 %v249_v32  ;;  %1499 = vmatprep.mubr.msk.f32.mxu1 %vm1946_vm0, %v1945_v21  ;;  %v672_v32 = vld [vmem:[#allocation6 + $0x3f8] sm:$0xff] }
 0x168   :  { %1502 = vmatprep.subr.mxu1 %v1945_v21 }
 0x16a   :  { %1500 = vmatmul.mubr.f32.vlgmr.msra.gmra.mrb[6].mxu1 %v328_v33  ;;  %v675_v33 = vld [vmem:[#allocation6 + $0x410] sm:$0xff] }
 0x16b   :  { %1503 = vmatpush3.msra.mxu1 %v1434_v24  ;;  %1504 = vmatprep.mubr.msk.f32.mxu1 %vm1946_vm0, %v1945_v21  ;;  %v659_v24 = vld [vmem:[#allocation6 + $0x390] sm:$0xff] }
 0x16c   :  { %1507 = vmatprep.subr.mxu1 %v1945_v21  ;;  %v1642_v28 = vpack.c.bf16 %v662_v25, %v659_v24  ;;  %v723_v24 = vld [vmem:[#allocation6 + $0x590] sm:$0xff] }
 0x239   :  { %v395_v35 = vpop.f32.mrb[4].mxu1 }
 0x23a   :  { %v396_v36 = vadd.f32 %v395_v35, %v2063_v34  ;;  %v1496_v37 = vpop.f32.mrb[5].mxu1  ;;  %v1646_v35 = vpack.c.bf16 %v668_v31, %v665_v30  ;;  %v729_v30 = vld [vmem:[#allocation6 + $0x5c0] sm:$0xff] }
 0x23b   :  { %v671_v37 = vld [vmem:[#allocation6 + $0x3f0] sm:$0xff] }
 0x23c   :  { %v469_v39 = vmax.f32 %v396_v36, -3.4028235e+38  ;;  %v1648_v36 = vpack.c.bf16 %v675_v33, %v672_v32  ;;  %v725_v33 = vld [vmem:[#allocation6 + $0x5a0] sm:$0xff] }
 0x23d   :  { %v465_v40 = vpop.f32.mrb[6].mxu1 }
 0x23e   :  { %v466_v42 = vadd.f32 %v465_v40, %v2066_v38  ;;  %v1501_v43 = vpop.f32.mrb[7].mxu1  ;;  %v472_v44 = vsel %vm471_vm1, %v469_v39, -inf  ;;  %v678_v40 = vld [vmem:[#allocation6 + $0x428] sm:$0xff] }
 0x23f   :  { %473 = vmax.xlane.f32.xlu0 %v472_v44 }
 0x240   :  { %v470_v45 = vmax.f32 %v466_v42, -3.4028235e+38  ;;  %v681_v42 = vld [vmem:[#allocation6 + $0x440] sm:$0xff] }
 0x241   :  { %v1652_v44 = vpack.c.bf16 %v681_v42, %v678_v40  ;;  %v731_v42 = vld [vmem:[#allocation6 + $0x5d0] sm:$0xff] }
 0x242   :  { %v475_v46 = vsel %vm471_vm1, %v470_v45, -inf }
 0x243   :  { %476 = vmax.xlane.f32.xlu0 %v475_v46  ;;  %v680_v46 = vld [vmem:[#allocation6 + $0x438] sm:$0xff] }
 0x2cc   :  { %v474_v47 = vpop.xlane.xlu0 %473 }
 0x2cd   :  { %v478_v48 = vsub.f32 %v469_v39, %v474_v47  ;;  %v674_v39 = vld [vmem:[#allocation6 + $0x408] sm:$0xff]  ;;  %v684_v47 = vld [vmem:[#allocation6 + $0x458] sm:$0xff] }
 0x2ce   :  { %v1650_v43 = vpack.c.bf16 %v674_v39, %v671_v37  ;;  %v735_v37 = vld [vmem:[#allocation6 + $0x5f0] sm:$0xff] }
 0x2cf   :  { %v480_v49 = vmul.f32 1.442695, %v478_v48  ;;  %v687_v48 = vld [vmem:[#allocation6 + $0x470] sm:$0xff] }
 0x2d0   :  { %v477_v50 = vpop.xlane.xlu0 %476 }
 0x2d1   :  { %1801 = vpow2.f32 %v480_v49  ;;  %v479_v51 = vsub.f32 %v470_v45, %v477_v50  ;;  %v677_v45 = vld [vmem:[#allocation6 + $0x420] sm:$0xff]  ;;  %v1656_v50 = vpack.c.bf16 %v687_v48, %v684_v47 }
 0x2d2   :  { %v1654_v49 = vpack.c.bf16 %v680_v46, %v677_v45 }
 0x2d3   :  { %v482_v52 = vmul.f32 1.442695, %v479_v51  ;;  %v683_v51 = vld [vmem:[#allocation6 + $0x450] sm:$0xff] }
 0x2d5   :  { %1803 = vpow2.f32 %v482_v52  ;;  %v686_v52 = vld [vmem:[#allocation6 + $0x468] sm:$0xff] }
 0x2db   :  { %v1802_v53 = vpop.eup %1801 }
 0x2dc   :  { %v484_v54 = vsel %vm471_vm1, %v1802_v53, 0.0 }
 0x2dd   :  { %485 = vadd.xlane.f32.xlu1 %v484_v54  ;;  %v693_v54 = vld [vmem:[#allocation6 + $0x4a0] sm:$0xff] }
 0x2df   :  { %v1804_v55 = vpop.eup %1803 }
 0x2e0   :  { %v487_v56 = vsel %vm471_vm1, %v1804_v55, 0.0 }
 0x2e1   :  { %488 = vadd.xlane.f32.xlu1 %v487_v56 }
 0x36a   :  { %v486_v57 = vpop.xlane.xlu1 %485 }
 0x36b   :  { %1805 = vrcp.f32 %v486_v57  ;;  %v689_v57 = vld [vmem:[#allocation6 + $0x480] sm:$0xff] }
 0x36e   :  { %v489_v58 = vpop.xlane.xlu1 %488 }
 0x36f   :  { %1807 = vrcp.f32 %v489_v58  ;;  %v692_v58 = vld [vmem:[#allocation6 + $0x498] sm:$0xff] }
 0x375   :  { %v1806_v61 = vpop.eup %1805 }
 0x376   :  { %v492_v62 = vmul.f32 %v1806_v61, %v1802_v53  ;;  %v690_v53 = vld [vmem:[#allocation6 + $0x488] sm:$0xff]  ;;  %v1662_v61 = vpack.c.bf16 %v692_v58, %v689_v57 }
 0x377   :  { %v1660_v56 = vpack.c.bf16 %v693_v54, %v690_v53  ;;  %v691_v54 = vld [vmem:[#allocation6 + $0x490] sm:$0xff]  ;;  %v646_v58 = vld [vmem:[#allocation6 + $0x328] sm:$0xff] }
 0x378   :  { %1505 = vmatmul.mubr.msk.f32.vlgmr.msra.gmra.mrb[8].mxu1 %vm471_vm1, %v492_v62  ;;  %v1664_v62 = vpack.c.bf16 %v699_v60, %v696_v59  ;;  %v697_v59 = vld [vmem:[#allocation6 + $0x4c0] sm:$0xff]  ;;  %v700_v60 = vld [vmem:[#allocation6 + $0x4d8] sm:$0xff] }
 0x379   :  { %v1808_v4 = vpop.eup %1807  ;;  %1508 = vmatpush3.msra.mxu1 %v1437_v27  ;;  %1509 = vmatprep.mubr.msk.f32.mxu1 %vm1946_vm0, %v1945_v21  ;;  %v669_v27 = vld [vmem:[#allocation6 + $0x3e0] sm:$0xff] }
 0x37a   :  { %v493_v6 = vmul.f32 %v1808_v4, %v1804_v55  ;;  %1629 = vmatprep.subr.bf16.mxu1 %v1628_v63  ;;  %v1644_v29 = vpack.c.bf16 %v669_v27, %v666_v26  ;;  %v1658_v55 = vpack.c.bf16 %v686_v52, %v683_v51  ;;  %v695_v63 = vld [vmem:[#allocation6 + $0x4b0] sm:$0xff]  ;;  %v1668_v4 = vpack.c.bf16 %v705_v2, %v702_v1  ;;  %v706_v2 = vld [vmem:[#allocation6 + $0x508] sm:$0xff] }
 0x37b   :  { %v1666_v3 = vpack.c.bf16 %v698_v0, %v695_v63  ;;  %v719_v27 = vld [vmem:[#allocation6 + $0x570] sm:$0xff]  ;;  %v649_v63 = vld [vmem:[#allocation6 + $0x340] sm:$0xff]  ;;  %v652_v0 = vld [vmem:[#allocation6 + $0x358] sm:$0xff] }
 0x37c   :  { %1510 = vmatmul.mubr.msk.f32.vlgmr.msra.gmra.mrb[10].mxu1 %vm471_vm1, %v493_v6  ;;  %v704_v6 = vld [vmem:[#allocation6 + $0x4f8] sm:$0xff]  ;;  %v703_v1 = vld [vmem:[#allocation6 + $0x4f0] sm:$0xff] }
 0x37d   :  { %1631 = vmatpush1.bf16.msra.mxu1 %v1630_v5  ;;  %801 = vmatprep.mubr.f32.mxu1 %v2034_v41  ;;  %v701_v5 = vld [vmem:[#allocation6 + $0x4e0] sm:$0xff] }
 0x37e   :  { %1633 = vmatprep.subr.bf16.mxu1 %v1632_v7  ;;  %v708_v7 = vld [vmem:[#allocation6 + $0x518] sm:$0xff]  ;;  %v1670_v9 = vpack.c.bf16 %v704_v6, %v701_v5  ;;  %v655_v5 = vld [vmem:[#allocation6 + $0x370] sm:$0xff]  ;;  %v658_v6 = vld [vmem:[#allocation6 + $0x388] sm:$0xff] }
 0x37f   :  { %v1672_v10 = vpack.c.bf16 %v711_v8, %v708_v7  ;;  %v709_v7 = vld [vmem:[#allocation6 + $0x520] sm:$0xff]  ;;  %v712_v8 = vld [vmem:[#allocation6 + $0x538] sm:$0xff] }
 0x381   :  { %1635 = vmatpush1.bf16.msra.mxu1 %v1634_v12  ;;  %v710_v12 = vld [vmem:[#allocation6 + $0x528] sm:$0xff] }
 0x382   :  { %1637 = vmatprep.subr.bf16.mxu1 %v1636_v13  ;;  %v714_v13 = vld [vmem:[#allocation6 + $0x548] sm:$0xff]  ;;  %v1674_v15 = vpack.c.bf16 %v710_v12, %v707_v11  ;;  %v661_v11 = vld [vmem:[#allocation6 + $0x3a0] sm:$0xff]  ;;  %v664_v12 = vld [vmem:[#allocation6 + $0x3b8] sm:$0xff] }
 0x383   :  { %v1676_v16 = vpack.c.bf16 %v717_v14, %v714_v13  ;;  %v715_v13 = vld [vmem:[#allocation6 + $0x550] sm:$0xff]  ;;  %v718_v14 = vld [vmem:[#allocation6 + $0x568] sm:$0xff] }
 0x385   :  { %1639 = vmatpush1.bf16.msra.mxu1 %v1638_v22  ;;  %v716_v22 = vld [vmem:[#allocation6 + $0x558] sm:$0xff] }
 0x386   :  { %1641 = vmatprep.subr.bf16.mxu1 %v1640_v23  ;;  %v720_v23 = vld [vmem:[#allocation6 + $0x578] sm:$0xff]  ;;  %v1678_v25 = vpack.c.bf16 %v716_v22, %v713_v19  ;;  %v667_v19 = vld [vmem:[#allocation6 + $0x3d0] sm:$0xff]  ;;  %v670_v22 = vld [vmem:[#allocation6 + $0x3e8] sm:$0xff] }
 0x387   :  { %v1680_v26 = vpack.c.bf16 %v723_v24, %v720_v23  ;;  %v721_v23 = vld [vmem:[#allocation6 + $0x580] sm:$0xff]  ;;  %v724_v24 = vld [vmem:[#allocation6 + $0x598] sm:$0xff] }
 0x389   :  { %1643 = vmatpush1.bf16.msra.mxu1 %v1642_v28  ;;  %v722_v28 = vld [vmem:[#allocation6 + $0x588] sm:$0xff] }
 0x38a   :  { %1645 = vmatprep.subr.bf16.mxu1 %v1644_v29  ;;  %v726_v29 = vld [vmem:[#allocation6 + $0x5a8] sm:$0xff]  ;;  %v1682_v31 = vpack.c.bf16 %v722_v28, %v719_v27  ;;  %v673_v27 = vld [vmem:[#allocation6 + $0x400] sm:$0xff]  ;;  %v676_v28 = vld [vmem:[#allocation6 + $0x418] sm:$0xff] }
 0x38b   :  { %v1684_v32 = vpack.c.bf16 %v729_v30, %v726_v29  ;;  %v727_v29 = vld [vmem:[#allocation6 + $0x5b0] sm:$0xff]  ;;  %v730_v30 = vld [vmem:[#allocation6 + $0x5c8] sm:$0xff] }
 0x38d   :  { %1647 = vmatpush1.bf16.msra.mxu1 %v1646_v35  ;;  %v728_v35 = vld [vmem:[#allocation6 + $0x5b8] sm:$0xff] }
 0x38e   :  { %1649 = vmatprep.subr.bf16.mxu1 %v1648_v36  ;;  %v732_v36 = vld [vmem:[#allocation6 + $0x5d8] sm:$0xff]  ;;  %v1686_v39 = vpack.c.bf16 %v728_v35, %v725_v33  ;;  %v679_v33 = vld [vmem:[#allocation6 + $0x430] sm:$0xff]  ;;  %v682_v35 = vld [vmem:[#allocation6 + $0x448] sm:$0xff] }
 0x38f   :  { %v1688_v40 = vpack.c.bf16 %v735_v37, %v732_v36  ;;  %v733_v36 = vld [vmem:[#allocation6 + $0x5e0] sm:$0xff]  ;;  %v736_v37 = vld [vmem:[#allocation6 + $0x5f8] sm:$0xff] }
 0x391   :  { %1651 = vmatpush1.bf16.msra.mxu1 %v1650_v43  ;;  %v734_v43 = vld [vmem:[#allocation6 + $0x5e8] sm:$0xff] }
 0x392   :  { %1653 = vmatprep.subr.bf16.mxu1 %v1652_v44  ;;  %v1690_v44 = vpack.c.bf16 %v734_v43, %v731_v42  ;;  %v685_v42 = vld [vmem:[#allocation6 + $0x460] sm:$0xff]  ;;  %v688_v43 = vld [vmem:[#allocation6 + $0x478] sm:$0xff] }
 0x395   :  { %1655 = vmatpush1.bf16.msra.mxu1 %v1654_v49 }
 0x396   :  { %1657 = vmatprep.subr.bf16.mxu1 %v1656_v50 }
 0x399   :  { %1659 = vmatpush1.bf16.msra.mxu1 %v1658_v55  ;;  %v694_v55 = vld [vmem:[#allocation6 + $0x4a8] sm:$0xff] }
 0x39a   :  { %1661 = vmatprep.subr.bf16.mxu1 %v1660_v56  ;;  %v643_v56 = vld [vmem:[#allocation6 + $0x310] sm:$0xff]  ;;  %v1692_v57 = vpack.c.bf16 %v694_v55, %v691_v54 }
 0x39d   :  { %1663 = vmatpush1.bf16.msra.mxu1 %v1662_v61  ;;  %v1694_v61 = vpack.c.bf16 %v646_v58, %v643_v56 }
 0x39e   :  { %1665 = vmatprep.subr.bf16.mxu1 %v1664_v62  ;;  %v1696_v62 = vpack.c.bf16 %v700_v60, %v697_v59 }
 0x3a1   :  { %1667 = vmatpush1.bf16.msra.mxu1 %v1666_v3  ;;  %v1698_v3 = vpack.c.bf16 %v652_v0, %v649_v63 }
 0x3a2   :  { %1669 = vmatprep.subr.bf16.mxu1 %v1668_v4  ;;  %v1700_v4 = vpack.c.bf16 %v706_v2, %v703_v1 }
 0x3a5   :  { %1671 = vmatpush1.bf16.msra.mxu1 %v1670_v9  ;;  %v1702_v9 = vpack.c.bf16 %v658_v6, %v655_v5  ;;  %v1202_v5 = vld [vmem:[#allocation8 + $0x8] sm:$0xff]  ;;  %v1204_v6 = vld [vmem:[#allocation8 + $0x18] sm:$0xff] }
 0x3a6   :  { %1673 = vmatprep.subr.bf16.mxu1 %v1672_v10  ;;  %v1704_v10 = vpack.c.bf16 %v712_v8, %v709_v7 }
 0x3a9   :  { %1675 = vmatpush1.bf16.msra.mxu1 %v1674_v15  ;;  %v1706_v15 = vpack.c.bf16 %v664_v12, %v661_v11  ;;  %v1203_v11 = vld [vmem:[#allocation8 + $0x10] sm:$0xff]  ;;  %v1206_v12 = vld [vmem:[#allocation8 + $0x28] sm:$0xff] }
 0x3aa   :  { %1677 = vmatprep.subr.bf16.mxu1 %v1676_v16  ;;  %v1708_v16 = vpack.c.bf16 %v718_v14, %v715_v13  ;;  %v1208_v13 = vld [vmem:[#allocation8 + $0x38] sm:$0xff] }
 0x3ad   :  { %1679 = vmatpush1.bf16.msra.mxu1 %v1678_v25  ;;  %v1710_v25 = vpack.c.bf16 %v670_v22, %v667_v19  ;;  %v1728_v19 = vpack.c.bf16 %v1208_v13, %v1206_v12  ;;  %v1205_v22 = vld [vmem:[#allocation8 + $0x20] sm:$0xff]  ;;  %v1246_v12 = vld [vmem:[#allocation8 + $0x168] sm:$0xff]  ;;  %v1248_v13 = vld [vmem:[#allocation8 + $0x178] sm:$0xff] }
 0x3ae   :  { %1681 = vmatprep.subr.bf16.mxu1 %v1680_v26  ;;  %v1712_v26 = vpack.c.bf16 %v724_v24, %v721_v23  ;;  %v1207_v23 = vld [vmem:[#allocation8 + $0x30] sm:$0xff]  ;;  %v1210_v24 = vld [vmem:[#allocation8 + $0x48] sm:$0xff] }
 0x3b1   :  { %1683 = vmatpush1.bf16.msra.mxu1 %v1682_v31  ;;  %v1714_v31 = vpack.c.bf16 %v676_v28, %v673_v27  ;;  %v1209_v28 = vld [vmem:[#allocation8 + $0x40] sm:$0xff] }
 0x3b2   :  { %1685 = vmatprep.subr.bf16.mxu1 %v1684_v32  ;;  %v1716_v32 = vpack.c.bf16 %v730_v30, %v727_v29  ;;  %v1211_v29 = vld [vmem:[#allocation8 + $0x50] sm:$0xff]  ;;  %v1214_v30 = vld [vmem:[#allocation8 + $0x68] sm:$0xff] }
 0x3b5   :  { %1687 = vmatpush1.bf16.msra.mxu1 %v1686_v39  ;;  %v1718_v39 = vpack.c.bf16 %v682_v35, %v679_v33  ;;  %v1213_v33 = vld [vmem:[#allocation8 + $0x60] sm:$0xff]  ;;  %v1215_v35 = vld [vmem:[#allocation8 + $0x70] sm:$0xff] }
 0x3b6   :  { %1689 = vmatprep.subr.bf16.mxu1 %v1688_v40  ;;  %v1720_v40 = vpack.c.bf16 %v736_v37, %v733_v36  ;;  %v1218_v36 = vld [vmem:[#allocation8 + $0x88] sm:$0xff]  ;;  %v1220_v37 = vld [vmem:[#allocation8 + $0x98] sm:$0xff] }
 0x3b9   :  { %1691 = vmatpush1.bf16.msra.mxu1 %v1690_v44  ;;  %v1722_v44 = vpack.c.bf16 %v688_v43, %v685_v42  ;;  %v1217_v42 = vld [vmem:[#allocation8 + $0x80] sm:$0xff]  ;;  %v1219_v43 = vld [vmem:[#allocation8 + $0x90] sm:$0xff] }
 0x3ba   :  { %1693 = vmatprep.subr.bf16.mxu1 %v1692_v57 }
 0x3bc   :  { %802 = vmatmul.mubr.f32.vlgmr.msra.gmra.mrb[12].mxu1 %v2038_v17 }
 0x3bd   :  { %807 = vmatprep.mubr.f32.mxu1 %v2040_v18  ;;  %1695 = vmatpush3.bf16.msra.mxu1 %v1694_v61 }
 0x3be   :  { %1697 = vmatprep.subr.bf16.mxu1 %v1696_v62 }
 0x3c0   :  { %808 = vmatmul.mubr.f32.gmra.mrb[14].mxu1 %v2044_v20 }
 0x3c1   :  { %878 = vmatprep.mubr.f32.mxu1 %v2034_v41  ;;  %1699 = vmatpush3.bf16.msra.mxu1 %v1698_v3 }
 0x3c2   :  { %1701 = vmatprep.subr.bf16.mxu1 %v1700_v4 }
 0x3c5   :  { %1703 = vmatpush3.bf16.msra.mxu1 %v1702_v9  ;;  %v1724_v9 = vpack.c.bf16 %v1204_v6, %v1202_v5  ;;  %v1239_v5 = vld [vmem:[#allocation8 + $0x130] sm:$0xff]  ;;  %v1242_v6 = vld [vmem:[#allocation8 + $0x148] sm:$0xff] }
 0x3c6   :  { %1705 = vmatprep.subr.bf16.mxu1 %v1704_v10  ;;  %v1201_v10 = vld [vmem:[#allocation8] sm:$0xff] }
 0x3c9   :  { %1707 = vmatpush3.bf16.msra.mxu1 %v1706_v15  ;;  %v1726_v15 = vpack.c.bf16 %v1203_v11, %v1201_v10  ;;  %v1241_v10 = vld [vmem:[#allocation8 + $0x140] sm:$0xff]  ;;  %v1243_v11 = vld [vmem:[#allocation8 + $0x150] sm:$0xff] }
 0x3ca   :  { %1709 = vmatprep.subr.bf16.mxu1 %v1708_v16 }
 0x3cd   :  { %1711 = vmatpush3.bf16.msra.mxu1 %v1710_v25  ;;  %v1212_v25 = vld [vmem:[#allocation8 + $0x58] sm:$0xff] }
 0x3ce   :  { %1713 = vmatprep.subr.bf16.mxu1 %v1712_v26  ;;  %v1730_v26 = vpack.c.bf16 %v1207_v23, %v1205_v22  ;;  %v1732_v27 = vpack.c.bf16 %v1212_v25, %v1210_v24  ;;  %v1250_v22 = vld [vmem:[#allocation8 + $0x188] sm:$0xff]  ;;  %v1252_v23 = vld [vmem:[#allocation8 + $0x198] sm:$0xff] }
 0x3cf   :  { %v1772_v25 = vpack.c.bf16 %v1252_v23, %v1250_v22 }
 0x3d1   :  { %1715 = vmatpush3.bf16.msra.mxu1 %v1714_v31  ;;  %v1216_v31 = vld [vmem:[#allocation8 + $0x78] sm:$0xff] }
 0x3d2   :  { %1717 = vmatprep.subr.bf16.mxu1 %v1716_v32  ;;  %v1736_v32 = vpack.c.bf16 %v1216_v31, %v1214_v30 }
 0x3d5   :  { %1719 = vmatpush3.bf16.msra.mxu1 %v1718_v39  ;;  %v1738_v39 = vpack.c.bf16 %v1215_v35, %v1213_v33  ;;  %v1258_v33 = vld [vmem:[#allocation8 + $0x1c8] sm:$0xff]  ;;  %v1260_v35 = vld [vmem:[#allocation8 + $0x1d8] sm:$0xff] }
 0x3d6   :  { %1721 = vmatprep.subr.bf16.mxu1 %v1720_v40  ;;  %v1740_v40 = vpack.c.bf16 %v1220_v37, %v1218_v36  ;;  %v1780_v37 = vpack.c.bf16 %v1260_v35, %v1258_v33 }
 0x3d9   :  { %1723 = vmatpush3.bf16.msra.mxu1 %v1722_v44  ;;  %v1222_v44 = vld [vmem:[#allocation8 + $0xa8] sm:$0xff] }
 0x3dc   :  { %879 = vmatmul.mubr.f32.vlgmr.msra.gmra.mrb[16].mxu1 %v2038_v17 }
 0x3dd   :  { %883 = vmatprep.mubr.f32.mxu1 %v2040_v18 }
 0x3e0   :  { %884 = vmatmul.mubr.f32.gmra.mrb[18].mxu1 %v2044_v20 }
 0x44b   :  { %v2082_v45 = vpop.f32.mrb[8].mxu1 }
 0x44c   :  { %v1506_v46 = vpop.f32.mrb[9].mxu1 }
 0x44f   :  { %v2084_v47 = vpop.f32.mrb[10].mxu1 }
 0x450   :  { %v1511_v48 = vpop.f32.mrb[11].mxu1 }
 0x48f   :  { %v803_v49 = vpop.f32.mrb[12].mxu1 }
 0x490   :  { %v805_v50 = vpop.f32.mrb[13].mxu1  ;;  %v889_v51 = vmul.f32 0.088388346, %v803_v49 }
 0x491   :  { %1513 = vmatpush3.xpose.msra.mxu0 %v805_v50 }
 0x492   :  { %1517 = vmatprep.subr.mxu0 %v1945_v21 }
 0x493   :  { %v809_v52 = vpop.f32.mrb[14].mxu1 }
 0x494   :  { %v811_v53 = vpop.f32.mrb[15].mxu1  ;;  %1515 = vmatmul.mubr.f32.vlgmr.msra.gmra.mrb[4].mxu0 %v889_v51  ;;  %v890_v41 = vmul.f32 0.088388346, %v809_v52 }
 0x495   :  { %1518 = vmatpush3.xpose.msra.mxu0 %v811_v53  ;;  %1519 = vmatprep.mubr.msk.f32.mxu0 %vm1946_vm0, %v1945_v21 }
 0x496   :  { %1522 = vmatprep.subr.mxu0 %v1945_v21 }
 0x498   :  { %1520 = vmatmul.mubr.f32.vlgmr.msra.gmra.mrb[6].mxu0 %v890_v41 }
 0x499   :  { %1524 = vmatprep.mubr.msk.f32.mxu0 %vm1946_vm0, %v1945_v21 }
 0x4af   :  { %v1478_v61 = vpop.f32.mrb[16].mxu1 }
 0x4b0   :  { %v1479_v62 = vpop.f32.mrb[17].mxu1 }
 0x4b1   :  { %v1480_v63 = vadd.f32 %v1479_v62, %v1478_v61  ;;  %v1233_v62 = vld [vmem:[#allocation8 + $0x100] sm:$0xff] }
 0x4b3   :  { %v1481_v0 = vpop.f32.mrb[18].mxu1  ;;  %1523 = vmatpush3.msra.mxu0 %v1480_v63  ;;  %v1235_v63 = vld [vmem:[#allocation8 + $0x110] sm:$0xff] }
 0x4b4   :  { %v1482_v1 = vpop.f32.mrb[19].mxu1  ;;  %1527 = vmatprep.subr.mxu0 %v1945_v21 }
 0x4b5   :  { %v1483_v2 = vadd.f32 %v1482_v1, %v1481_v0  ;;  %v1238_v0 = vld [vmem:[#allocation8 + $0x128] sm:$0xff]  ;;  %v1240_v1 = vld [vmem:[#allocation8 + $0x138] sm:$0xff] }
 0x567   :  { %v957_v46 = vpop.f32.mrb[4].mxu0 }
 0x568   :  { %v958_v48 = vadd.f32 %v957_v46, %v2063_v34  ;;  %v1516_v49 = vpop.f32.mrb[5].mxu0  ;;  %v1224_v46 = vld [vmem:[#allocation8 + $0xb8] sm:$0xff] }
 0x569   :  { %v1744_v49 = vpack.c.bf16 %v1224_v46, %v1222_v44 }
 0x56a   :  { %v1031_v50 = vmax.f32 %v958_v48, -3.4028235e+38  ;;  %v1742_v48 = vpack.c.bf16 %v1219_v43, %v1217_v42  ;;  %v1262_v42 = vld [vmem:[#allocation8 + $0x1e8] sm:$0xff]  ;;  %v1264_v43 = vld [vmem:[#allocation8 + $0x1f8] sm:$0xff] }
 0x56b   :  { %v1027_v51 = vpop.f32.mrb[6].mxu0  ;;  %v1784_v46 = vpack.c.bf16 %v1264_v43, %v1262_v42 }
 0x56c   :  { %v1028_v52 = vadd.f32 %v1027_v51, %v2066_v38  ;;  %v1033_v53 = vsel %vm471_vm1, %v1031_v50, -inf  ;;  %v1521_v41 = vpop.f32.mrb[7].mxu0  ;;  %v1223_v51 = vld [vmem:[#allocation8 + $0xb0] sm:$0xff] }
 0x56d   :  { %1034 = vmax.xlane.f32.xlu0 %v1033_v53  ;;  %v1228_v53 = vld [vmem:[#allocation8 + $0xd8] sm:$0xff] }
 0x56e   :  { %v1032_v54 = vmax.f32 %v1028_v52, -3.4028235e+38  ;;  %v1226_v52 = vld [vmem:[#allocation8 + $0xc8] sm:$0xff] }
 0x570   :  { %v1036_v55 = vsel %vm471_vm1, %v1032_v54, -inf }
 0x571   :  { %1037 = vmax.xlane.f32.xlu1 %v1036_v55  ;;  %v1225_v55 = vld [vmem:[#allocation8 + $0xc0] sm:$0xff] }
 0x5fa   :  { %v1035_v17 = vpop.xlane.xlu0 %1034 }
 0x5fb   :  { %v1039_v18 = vsub.f32 %v1031_v50, %v1035_v17  ;;  %v1221_v50 = vld [vmem:[#allocation8 + $0xa0] sm:$0xff]  ;;  %v1227_v17 = vld [vmem:[#allocation8 + $0xd0] sm:$0xff] }
 0x5fc   :  { %v1746_v41 = vpack.c.bf16 %v1223_v51, %v1221_v50 }
 0x5fd   :  { %v1041_v56 = vmul.f32 1.442695, %v1039_v18  ;;  %v1230_v18 = vld [vmem:[#allocation8 + $0xe8] sm:$0xff] }
 0x5fe   :  { %v1038_v20 = vpop.xlane.xlu1 %1037 }
 0x5ff   :  { %1809 = vpow2.f32 %v1041_v56  ;;  %v1040_v57 = vsub.f32 %v1032_v54, %v1038_v20  ;;  %v1748_v54 = vpack.c.bf16 %v1228_v53, %v1226_v52  ;;  %v1232_v56 = vld [vmem:[#allocation8 + $0xf8] sm:$0xff]  ;;  %v1750_v20 = vpack.c.bf16 %v1227_v17, %v1225_v55 }
 0x601   :  { %v1043_v34 = vmul.f32 1.442695, %v1040_v57  ;;  %v1752_v57 = vpack.c.bf16 %v1232_v56, %v1230_v18 }
 0x603   :  { %1811 = vpow2.f32 %v1043_v34  ;;  %v1229_v34 = vld [vmem:[#allocation8 + $0xe0] sm:$0xff] }
 0x609   :  { %v1810_v58 = vpop.eup %1809 }
 0x60a   :  { %v1045_v59 = vsel %vm471_vm1, %v1810_v58, 0.0 }
 0x60b   :  { %1046 = vadd.xlane.f32.xlu0 %v1045_v59  ;;  %v1234_v59 = vld [vmem:[#allocation8 + $0x108] sm:$0xff] }
 0x60d   :  { %v1812_v38 = vpop.eup %1811 }
 0x60e   :  { %v1048_v60 = vsel %vm471_vm1, %v1812_v38, 0.0 }
 0x60f   :  { %1049 = vadd.xlane.f32.xlu1 %v1048_v60 }
 0x698   :  { %v1047_v3 = vpop.xlane.xlu0 %1046 }
 0x699   :  { %1813 = vrcp.f32 %v1047_v3  ;;  %v1760_v3 = vpack.c.bf16 %v1240_v1, %v1238_v0 }
 0x69c   :  { %v1050_v4 = vpop.xlane.xlu1 %1049 }
 0x69d   :  { %1815 = vrcp.f32 %v1050_v4  ;;  %v1237_v4 = vld [vmem:[#allocation8 + $0x120] sm:$0xff] }
 0x6a3   :  { %v1814_v7 = vpop.eup %1813 }
 0x6a4   :  { %v1053_v8 = vmul.f32 %v1814_v7, %v1810_v58  ;;  %v1231_v58 = vld [vmem:[#allocation8 + $0xf0] sm:$0xff]  ;;  %v1244_v7 = vld [vmem:[#allocation8 + $0x158] sm:$0xff] }
 0x6a5   :  { %v1754_v60 = vpack.c.bf16 %v1231_v58, %v1229_v34 }
 0x6a6   :  { %1525 = vmatmul.mubr.msk.f32.vlgmr.msra.gmra.mrb[8].mxu0 %vm471_vm1, %v1053_v8  ;;  %v1762_v8 = vpack.c.bf16 %v1239_v5, %v1237_v4 }
 0x6a7   :  { %v1816_v14 = vpop.eup %1815  ;;  %1528 = vmatpush3.msra.mxu0 %v1483_v2  ;;  %1529 = vmatprep.mubr.msk.f32.mxu0 %vm1946_vm0, %v1945_v21  ;;  %v1734_v21 = vpack.c.bf16 %v1211_v29, %v1209_v28  ;;  %v1758_v2 = vpack.c.bf16 %v1235_v63, %v1233_v62  ;;  %v1254_v28 = vld [vmem:[#allocation8 + $0x1a8] sm:$0xff]  ;;  %v1256_v29 = vld [vmem:[#allocation8 + $0x1b8] sm:$0xff] }
 0x6a8   :  { %v1054_v16 = vmul.f32 %v1816_v14, %v1812_v38  ;;  %1725 = vmatprep.subr.bf16.mxu0 %v1724_v9  ;;  %v1236_v38 = vld [vmem:[#allocation8 + $0x118] sm:$0xff]  ;;  %v1764_v9 = vpack.c.bf16 %v1244_v7, %v1242_v6  ;;  %v1766_v14 = vpack.c.bf16 %v1243_v11, %v1241_v10  ;;  %v1776_v31 = vpack.c.bf16 %v1256_v29, %v1254_v28 }
 0x6a9   :  { %v1756_v61 = vpack.c.bf16 %v1236_v38, %v1234_v59 }
 0x6aa   :  { %1530 = vmatmul.mubr.msk.f32.vlgmr.msra.gmra.mrb[10].mxu0 %vm471_vm1, %v1054_v16  ;;  %v1245_v16 = vld [vmem:[#allocation8 + $0x160] sm:$0xff] }
 0x6ab   :  { %1727 = vmatpush1.bf16.msra.mxu0 %v1726_v15  ;;  %v1768_v15 = vpack.c.bf16 %v1248_v13, %v1246_v12 }
 0x6ac   :  { %1729 = vmatprep.subr.bf16.mxu0 %v1728_v19  ;;  %v1247_v19 = vld [vmem:[#allocation8 + $0x170] sm:$0xff] }
 0x6ad   :  { %v1770_v24 = vpack.c.bf16 %v1247_v19, %v1245_v16 }
 0x6af   :  { %1731 = vmatpush1.bf16.msra.mxu0 %v1730_v26  ;;  %v1249_v26 = vld [vmem:[#allocation8 + $0x180] sm:$0xff] }
 0x6b0   :  { %1733 = vmatprep.subr.bf16.mxu0 %v1732_v27  ;;  %v1251_v27 = vld [vmem:[#allocation8 + $0x190] sm:$0xff] }
 0x6b1   :  { %v1774_v30 = vpack.c.bf16 %v1251_v27, %v1249_v26 }
 0x6b3   :  { %1735 = vmatpush1.bf16.msra.mxu0 %v1734_v21  ;;  %v1253_v21 = vld [vmem:[#allocation8 + $0x1a0] sm:$0xff] }
 0x6b4   :  { %1737 = vmatprep.subr.bf16.mxu0 %v1736_v32  ;;  %v1255_v32 = vld [vmem:[#allocation8 + $0x1b0] sm:$0xff] }
 0x6b5   :  { %v1778_v36 = vpack.c.bf16 %v1255_v32, %v1253_v21 }
 0x6b7   :  { %1739 = vmatpush1.bf16.msra.mxu0 %v1738_v39  ;;  %v1257_v39 = vld [vmem:[#allocation8 + $0x1c0] sm:$0xff] }
 0x6b8   :  { %1741 = vmatprep.subr.bf16.mxu0 %v1740_v40  ;;  %v1259_v40 = vld [vmem:[#allocation8 + $0x1d0] sm:$0xff] }
 0x6b9   :  { %v1782_v44 = vpack.c.bf16 %v1259_v40, %v1257_v39 }
 0x6bb   :  { %1743 = vmatpush1.bf16.msra.mxu0 %v1742_v48  ;;  %v1261_v48 = vld [vmem:[#allocation8 + $0x1e0] sm:$0xff] }
 0x6bc   :  { %1745 = vmatprep.subr.bf16.mxu0 %v1744_v49  ;;  %v1263_v49 = vld [vmem:[#allocation8 + $0x1f0] sm:$0xff] }
 0x6bd   :  { %v1786_v50 = vpack.c.bf16 %v1263_v49, %v1261_v48 }
 0x6bf   :  { %1747 = vmatpush1.bf16.msra.mxu0 %v1746_v41 }
 0x6c0   :  { %1749 = vmatprep.subr.bf16.mxu0 %v1748_v54 }
 0x6c3   :  { %1751 = vmatpush1.bf16.msra.mxu0 %v1750_v20 }
 0x6c4   :  { %1753 = vmatprep.subr.bf16.mxu0 %v1752_v57 }
 0x6c7   :  { %1755 = vmatpush1.bf16.msra.mxu0 %v1754_v60 }
 0x6c8   :  { %1757 = vmatprep.subr.bf16.mxu0 %v1756_v61 }
 0x6cb   :  { %1759 = vmatpush1.bf16.msra.mxu0 %v1758_v2 }
 0x6cc   :  { %1761 = vmatprep.subr.bf16.mxu0 %v1760_v3 }
 0x6cf   :  { %1763 = vmatpush1.bf16.msra.mxu0 %v1762_v8 }
 0x6d0   :  { %1765 = vmatprep.subr.bf16.mxu0 %v1764_v9 }
 0x6d3   :  { %1767 = vmatpush1.bf16.msra.mxu0 %v1766_v14 }
 0x6d4   :  { %1769 = vmatprep.subr.bf16.mxu0 %v1768_v15 }
 0x6d7   :  { %1771 = vmatpush1.bf16.msra.mxu0 %v1770_v24 }
 0x6d8   :  { %1773 = vmatprep.subr.bf16.mxu0 %v1772_v25 }
 0x6db   :  { %1775 = vmatpush1.bf16.msra.mxu0 %v1774_v30 }
 0x6dc   :  { %1777 = vmatprep.subr.bf16.mxu0 %v1776_v31 }
 0x6df   :  { %1779 = vmatpush1.bf16.msra.mxu0 %v1778_v36 }
 0x6e0   :  { %1781 = vmatprep.subr.bf16.mxu0 %v1780_v37 }
 0x6e3   :  { %1783 = vmatpush1.bf16.msra.mxu0 %v1782_v44 }
 0x6e4   :  { %1785 = vmatprep.subr.bf16.mxu0 %v1784_v46 }
 0x6e7   :  { %1787 = vmatpush1.bf16.msra.mxu0 %v1786_v50 }
 0x779   :  { %v1124_v51 = vpop.f32.mrb[8].mxu0 }
 0x77a   :  { %v1526_v52 = vpop.f32.mrb[9].mxu0  ;;  %1329 = vmatprep.mubr.f32.mxu0 %v1124_v51 }
 0x77b   :  { %1330 = vmatmul.mubr.f32.vlgmr.msra.gmra.mrb[12].mxu0 %v2082_v45 }
 0x77d   :  { %v1197_v53 = vpop.f32.mrb[10].mxu0 }
 0x77e   :  { %v1531_v41 = vpop.f32.mrb[11].mxu0  ;;  %1335 = vmatprep.mubr.f32.mxu0 %v1197_v53 }
 0x77f   :  { %1336 = vmatmul.mubr.f32.gmra.mrb[14].mxu0 %v2084_v47 }
 0x84e   :  { %v1331_v54 = vpop.f32.mrb[12].mxu0 }
 0x84f   :  { %1373 = vst [vmem:[#allocation11] sm:$0xff] %v1331_v54  ;;  %v1333_v55 = vpop.f32.mrb[13].mxu0 }
 0x850   :  { %1374 = vst [vmem:[#allocation11 + $0x8] sm:$0xff] %v1333_v55 }
 0x852   :  { %v1337_v17 = vpop.f32.mrb[14].mxu0 }
 0x853   :  { %1375 = vst [vmem:[#allocation11 + $0x10] sm:$0xff] %v1337_v17  ;;  %v1339_v18 = vpop.f32.mrb[15].mxu0 }
 0x854   :  { %1376 = vst [vmem:[#allocation11 + $0x18] sm:$0xff] %v1339_v18 }
 0x855   :  { %1916 = shalt.err (!%p1913_p8)
}
 0x856   :  { %s1917_s19 = scalar_lea.hbm %s2127_s4, 512 }
 0x857   :  { %p1918_p9 = scmp.ne.s32.totalorder %s2127_s4, %s1917_s19  ;;  %p1921_p10 = scmp.lt.u32.totalorder %s1917_s19, %s2127_s4 }
 0x859   :  { %p1923_p11 = pnand %p1921_p10, %p1918_p9 }
 0x85b   :  { %1926 = shalt.err (!%p1923_p11)
}
 0x85c   :  { %1388 = dma.vmem_to_hbm [thread:$0]  %s1383_s15, 512, %s2127_s4, [#allocation5], %s1939_s1, %s1939_s1, %s1940_s13  }
 0x85d   :  { %1933 = dma.done.wait [#allocation5], 512  }
 0x85e   :  { %1934 = vsyncadd [#allocation5], 4294966784 }
 0x85f   :  { %1392 = vsyncpa [#allocation4], 1 }
 0x860   :  { %1393 = vsyncpa [#allocation7], 1 }
 0x861   :  { %1394 = vsyncpa [#allocation10], 1 }
 0x862   :  { %1395 = vsyncpa [#allocation5], 1 }

</bundles_post_ra>
